<compile_context>
chip_gen: v7x
topology: tpu7x:2x2x1
jax: 0.10.0
libtpu: 0.0.40
codegen_flags: <defaults>
</compile_context>

<pallas_src>
import functools

import jax
import jax.numpy as jnp
from jax.experimental import pallas as pl
from jax.experimental.pallas import tpu as pltpu


# ------------------------------ GELU (exact) -------------------------------- #

def _erf(x):
    # Abramowitz & Stegun 7.1.26 rational approximation of erf, |err| <= 1.5e-7
    # (f32-precision level).  Uses only abs/exp/mul/add/where, which all lower
    # cleanly in Mosaic.
    # TODO(synk): switch to lax.erf once its Pallas/Mosaic lowering is
    # guaranteed on all targeted jaxlib versions.
    a1, a2, a3, a4, a5 = (0.254829592, -0.284496736, 1.421413741,
                          -1.453152027, 1.061405429)
    p = 0.3275911
    ax = jnp.abs(x)
    t = 1.0 / (1.0 + p * ax)
    poly = ((((a5 * t + a4) * t + a3) * t + a2) * t + a1) * t
    y = 1.0 - poly * jnp.exp(-ax * ax)
    return jnp.where(x < 0.0, -y, y)


def _gelu(x):
    # torch.nn.GELU() default = exact erf formulation.
    return 0.5 * x * (1.0 + _erf(x * 0.7071067811865476))


# ----------------------------- Pallas kernel -------------------------------- #

def _fused_qv_kernel(obs_ref, joint_ref, s_ref,
                     w1s_ref, w1a_ref, w1id_ref, qb1_ref,
                     qw2_ref, qb2_ref, qw3_ref, qb3_ref,
                     vw1_ref, vb1_ref, vw2t_ref, vb2_ref,
                     qo_ref, vo_ref,
                     *, n_agents, n_actions):
    obs = obs_ref[...]
    joint = joint_ref[...]

    # Shared part of the first Q layer (split-W1 fold): computed once per
    # deduplicated row, reused by all n_agents per-agent rows.
    base = (jnp.dot(obs, w1s_ref[...], preferred_element_type=jnp.float32)
            + jnp.dot(joint, w1a_ref[...], preferred_element_type=jnp.float32)
            + qb1_ref[...])

    w1a = w1a_ref[...]
    w1id = w1id_ref[...]
    qw2 = qw2_ref[...]
    qb2 = qb2_ref[...]
    qw3 = qw3_ref[...]
    qb3 = qb3_ref[...]

    q_parts = []
    for a in range(n_agents):                  # static unroll; n_agents small
        lo = a * n_actions
        hi = lo + n_actions
        # Subtract the acting agent's own one-hot contribution, add its id row.
        own = jnp.dot(joint[:, lo:hi], w1a[lo:hi, :],
                      preferred_element_type=jnp.float32)
        pre1 = base - own + w1id[a:a + 1, :]
        h = _gelu(pre1)
        h = _gelu(jnp.dot(h, qw2, preferred_element_type=jnp.float32) + qb2)
        q_parts.append(jnp.dot(h, qw3, preferred_element_type=jnp.float32) + qb3)

    # Lane-pack the per-agent results -> (tv, n_agents*n_actions); the HBM
    # writeback carries only real data (no 128-lane zero padding).
    qo_ref[...] = jnp.concatenate(q_parts, axis=-1).astype(qo_ref.dtype)

    # ---- V branch on the deduplicated rows --------------------------------- #
    s = s_ref[...]
    hv = _gelu(jnp.dot(s, vw1_ref[...], preferred_element_type=jnp.float32)
               + vb1_ref[...])
    # Final layer has out_features == 1: VPU multiply + lane reduction.
    v = jnp.sum(hv * vw2t_ref[...], axis=-1, keepdims=True) + vb2_ref[...]
    vo_ref[...] = v.astype(vo_ref.dtype)


# -------------------------------- wrapper ------------------------------------ #

def _choose_tile(rv, tv_target):
    tv_target = max(8, (tv_target // 8) * 8)
    if rv > tv_target:
        return tv_target
    # Whole problem fits in one tile: still split in two when large enough so
    # v7x's two TensorCores both get work on the 'parallel' grid axis.
    half = rv // 2
    if half >= 256 and half % 8 == 0:
        return half
    return rv


def fused_qv_pallas(obs2d, joint_actions, state2d, params, n_agents, n_actions,
                    *, tv_target=2048):
    """One pallas_call computing both MLPs on deduplicated rows.

    obs2d:         (bs*ts, state_dim)            -- dedup Q-state rows
    joint_actions: (bs*ts, n_agents*n_actions)   -- all agents' one-hots
    state2d:       (bs*ts, state_dim)            -- dedup V-state rows
    returns (q_packed (bs*ts, n_agents*n_actions), v_dedup (bs*ts, 1))
    """
    rv, state_dim = obs2d.shape
    e = params["q_w1"].shape[1]
    na = n_agents * n_actions

    # Split W1 by input segment (cheap static slices of the weight).
    w1 = params["q_w1"]
    w1s = w1[:state_dim]                    # (state_dim, e)
    w1a = w1[state_dim:state_dim + na]      # (n_agents*n_actions, e)
    w1id = w1[state_dim + na:]              # (n_agents, e)
    vw2t = params["v_w2"].reshape(1, e)     # (1, e): row form for VPU reduce

    tv = _choose_tile(rv, tv_target)
    grid = (pl.cdiv(rv, tv),)

    row_map = lambda i: (i, 0)
    const_map = lambda i: (0, 0)

    kernel = functools.partial(_fused_qv_kernel,
                               n_agents=n_agents, n_actions=n_actions)

    q_packed, v_dedup = pl.pallas_call(
        kernel,
        out_shape=(jax.ShapeDtypeStruct((rv, na), jnp.float32),
                   jax.ShapeDtypeStruct((rv, 1), jnp.float32)),
        grid_spec=pltpu.PrefetchScalarGridSpec(
            num_scalar_prefetch=0,
            grid=grid,
            in_specs=[
                pl.BlockSpec((tv, state_dim), row_map),    # obs (dedup)
                pl.BlockSpec((tv, na), row_map),           # joint action one-hots
                pl.BlockSpec((tv, state_dim), row_map),    # state (dedup, V)
                pl.BlockSpec((state_dim, e), const_map),   # W1_state
                pl.BlockSpec((na, e), const_map),          # W1_act
                pl.BlockSpec((n_agents, e), const_map),    # W1_agent
                pl.BlockSpec((1, e), const_map),           # q_b1
                pl.BlockSpec((e, e), const_map),           # q_w2
                pl.BlockSpec((1, e), const_map),           # q_b2
                pl.BlockSpec((e, n_actions), const_map),   # q_w3
                pl.BlockSpec((1, n_actions), const_map),   # q_b3
                pl.BlockSpec((state_dim, e), const_map),   # v_w1
                pl.BlockSpec((1, e), const_map),           # v_b1
                pl.BlockSpec((1, e), const_map),           # v_w2 (row form)
                pl.BlockSpec((1, 1), const_map),           # v_b2
            ],
            out_specs=[
                pl.BlockSpec((tv, na), row_map),           # Q lane-packed
                pl.BlockSpec((tv, 1), row_map),            # V dedup
            ],
        ),
        compiler_params=pltpu.CompilerParams(
            dimension_semantics=("parallel",)),
    )(obs2d, joint_actions, state2d,
      w1s, w1a, w1id, params["q_b1"],
      params["q_w2"], params["q_b2"], params["q_w3"], params["q_b3"],
      params["v_w1"], params["v_b1"], vw2t, params["v_b2"])

    return q_packed, v_dedup


# ----------------------------- QTranAlt forward ------------------------------ #

def qtran_alt_forward(params, obs, actions_onehot, state, n_agents, n_actions):
    """Replicates QTranAlt.forward (network_size == 'small').

    obs:            (bs, ts, state_dim)
    actions_onehot: (bs, ts, n_agents, n_actions)
    state:          (bs, ts, state_dim)
    returns (q_outputs, v_outputs) with shapes
            (bs*ts*n_agents, n_actions) and (bs*ts*n_agents, 1)
    """
    bs, ts, state_dim = obs.shape

    obs2d = obs.reshape(-1, state_dim)                              # (bs*ts, S)
    joint = actions_onehot.reshape(bs * ts, n_agents * n_actions)   # (bs*ts, A*U)
    state2d = state.reshape(-1, state_dim)                          # (bs*ts, S)

    q_packed, v_dedup = fused_qv_pallas(obs2d, joint, state2d, params,
                                        n_agents, n_actions)

    # Row order (b, t, a) with agent fastest == original repeat/view order.
    q_outputs = q_packed.reshape(-1, n_actions)
    v_outputs = jnp.broadcast_to(v_dedup, (bs * ts, n_agents)).reshape(-1, 1)
    return q_outputs, v_outputs


# ---------------------------------- params ----------------------------------- #

def init_params(key, state_dim, n_agents, n_actions, embed_dim):
    """PyTorch-Linear-style uniform init.  Weights stored (in, out) so the
    kernel does x @ W directly; biases as (1, out) 2-D rows for TPU layout."""
    q_in = state_dim + n_agents * n_actions + n_agents

    def linear(k, fan_in, fan_out):
        kw, kb = jax.random.split(k)
        bound = 1.0 / jnp.sqrt(jnp.float32(fan_in))
        w = jax.random.uniform(kw, (fan_in, fan_out), jnp.float32, -bound, bound)
        b = jax.random.uniform(kb, (1, fan_out), jnp.float32, -bound, bound)
        return w, b

    keys = jax.random.split(key, 5)
    params = {}
    params["q_w1"], params["q_b1"] = linear(keys[0], q_in, embed_dim)
    params["q_w2"], params["q_b2"] = linear(keys[1], embed_dim, embed_dim)
    params["q_w3"], params["q_b3"] = linear(keys[2], embed_dim, n_actions)
    params["v_w1"], params["v_b1"] = linear(keys[3], state_dim, embed_dim)
    params["v_w2"], params["v_b2"] = linear(keys[4], embed_dim, 1)
    return params


# ----------------------------- pure-JAX reference ----------------------------- #

def _ref_gelu(x):
    return jax.nn.gelu(x, approximate=False)


def _ref_forward(params, obs, actions_onehot, state, n_agents, n_actions):
    bs, ts, state_dim = obs.shape
    repeated_states = jnp.tile(obs, (1, 1, n_agents)).reshape(-1, state_dim)
    tiled_actions = jnp.tile(actions_onehot, (1, 1, n_agents, 1))
    agent_mask = 1.0 - jnp.eye(n_agents, dtype=actions_onehot.dtype)
    agent_mask = jnp.tile(agent_mask.reshape(-1, 1), (1, n_actions))
    masked_actions = (tiled_actions * agent_mask[None, None]).reshape(
        -1, n_agents * n_actions)
    agent_ids = jnp.tile(jnp.eye(n_agents, dtype=obs.dtype), (bs * ts, 1))
    x = jnp.concatenate([repeated_states, masked_actions, agent_ids], axis=1)
    h = _ref_gelu(x @ params["q_w1"] + params["q_b1"])
    h = _ref_gelu(h @ params["q_w2"] + params["q_b2"])
    q = h @ params["q_w3"] + params["q_b3"]
    s = jnp.tile(state, (1, 1, n_agents)).reshape(-1, state_dim)
    hv = _ref_gelu(s @ params["v_w1"] + params["v_b1"])
    v = hv @ params["v_w2"] + params["v_b2"]
    return q, v


# ----------------------------------- main ------------------------------------ #

if __name__ == "__main__":
    # Small, module-consistent shapes (network_size == 'small').
    bs, ts = 2, 8
    n_agents, n_actions = 4, 8
    state_dim = 32          # = prod(args.state_shape); obs dim assumed == state_dim
    embed_dim = 32

    key = jax.random.PRNGKey(0)
    k_params, k_obs, k_state, k_act = jax.random.split(key, 4)

    params = init_params(k_params, state_dim, n_agents, n_actions, embed_dim)

    obs = jax.random.normal(k_obs, (bs, ts, state_dim), jnp.float32)
    state = jax.random.normal(k_state, (bs, ts, state_dim), jnp.float32)
    action_idx = jax.random.randint(k_act, (bs, ts, n_agents), 0, n_actions)
    actions_onehot = jax.nn.one_hot(action_idx, n_actions, dtype=jnp.float32)

    fwd = jax.jit(functools.partial(qtran_alt_forward,
                                    n_agents=n_agents, n_actions=n_actions))
    q_out, v_out = fwd(params, obs, actions_onehot, state)
    jax.block_until_ready((q_out, v_out))

    assert q_out.shape == (bs * ts * n_agents, n_actions)
    assert v_out.shape == (bs * ts * n_agents, 1)

    # correctness vs. pure-JAX reference (exact-erf GELU, un-split W1):
    # 1e-4 comfortably covers the split-W1 summation reordering and the
    # 1.5e-7 erf approximation while still catching bf16/tanh-GELU regressions.
    q_ref, v_ref = _ref_forward(params, obs, actions_onehot, state,
                                n_agents, n_actions)
    assert jnp.max(jnp.abs(q_out - q_ref)) < 1e-4
    assert jnp.max(jnp.abs(v_out - v_ref)) < 1e-4

    print("KERNEL_OK")
</pallas_src>

<mosaic_0001>
module attributes {stable_mosaic.version = 11 : i64} {
  func.func @_fused_qv_kernel(%arg0: i32, %arg1: memref<16x32xf32, #tpu.memory_space<vmem>>, %arg2: memref<16x32xf32, #tpu.memory_space<vmem>>, %arg3: memref<16x32xf32, #tpu.memory_space<vmem>>, %arg4: memref<32x32xf32, #tpu.memory_space<vmem>>, %arg5: memref<32x32xf32, #tpu.memory_space<vmem>>, %arg6: memref<4x32xf32, #tpu.memory_space<vmem>>, %arg7: memref<1x32xf32, #tpu.memory_space<vmem>>, %arg8: memref<32x32xf32, #tpu.memory_space<vmem>>, %arg9: memref<1x32xf32, #tpu.memory_space<vmem>>, %arg10: memref<32x8xf32, #tpu.memory_space<vmem>>, %arg11: memref<1x8xf32, #tpu.memory_space<vmem>>, %arg12: memref<32x32xf32, #tpu.memory_space<vmem>>, %arg13: memref<1x32xf32, #tpu.memory_space<vmem>>, %arg14: memref<1x32xf32, #tpu.memory_space<vmem>>, %arg15: memref<1x1xf32, #tpu.memory_space<vmem>>, %arg16: memref<16x32xf32, #tpu.memory_space<vmem>>, %arg17: memref<16x1xf32, #tpu.memory_space<vmem>>) attributes {dimension_semantics = [#tpu.dimension_semantics<parallel>], iteration_bounds = array<i64: 1>, scalar_prefetch = 0 : i64, scratch_operands = 0 : i64, tpu.core_type = #tpu.core_type<tc>, window_params = [{transform_indices = @transform_0, window_bounds = array<i64: 16, 32>}, {transform_indices = @transform_1, window_bounds = array<i64: 16, 32>}, {transform_indices = @transform_2, window_bounds = array<i64: 16, 32>}, {pipeline_mode = #tpu.pipeline_mode<synchronous>, transform_indices = @transform_3, window_bounds = array<i64: 32, 32>}, {pipeline_mode = #tpu.pipeline_mode<synchronous>, transform_indices = @transform_4, window_bounds = array<i64: 32, 32>}, {pipeline_mode = #tpu.pipeline_mode<synchronous>, transform_indices = @transform_5, window_bounds = array<i64: 4, 32>}, {pipeline_mode = #tpu.pipeline_mode<synchronous>, transform_indices = @transform_6, window_bounds = array<i64: 1, 32>}, {pipeline_mode = #tpu.pipeline_mode<synchronous>, transform_indices = @transform_7, window_bounds = array<i64: 32, 32>}, {pipeline_mode = #tpu.pipeline_mode<synchronous>, transform_indices = @transform_8, window_bounds = array<i64: 1, 32>}, {pipeline_mode = #tpu.pipeline_mode<synchronous>, transform_indices = @transform_9, window_bounds = array<i64: 32, 8>}, {pipeline_mode = #tpu.pipeline_mode<synchronous>, transform_indices = @transform_10, window_bounds = array<i64: 1, 8>}, {pipeline_mode = #tpu.pipeline_mode<synchronous>, transform_indices = @transform_11, window_bounds = array<i64: 32, 32>}, {pipeline_mode = #tpu.pipeline_mode<synchronous>, transform_indices = @transform_12, window_bounds = array<i64: 1, 32>}, {pipeline_mode = #tpu.pipeline_mode<synchronous>, transform_indices = @transform_13, window_bounds = array<i64: 1, 32>}, {pipeline_mode = #tpu.pipeline_mode<synchronous>, transform_indices = @transform_14, window_bounds = array<i64: 1, 1>}, {transform_indices = @transform_15, window_bounds = array<i64: 16, 32>}, {transform_indices = @transform_16, window_bounds = array<i64: 16, 1>}]} {
    %c0 = arith.constant 0 : index
    %c0_0 = arith.constant 0 : index
    %0 = vector.load %arg1[%c0, %c0_0] : memref<16x32xf32, #tpu.memory_space<vmem>>, vector<16x32xf32>
    %c0_1 = arith.constant 0 : index
    %c0_2 = arith.constant 0 : index
    %1 = vector.load %arg2[%c0_1, %c0_2] : memref<16x32xf32, #tpu.memory_space<vmem>>, vector<16x32xf32>
    %c0_3 = arith.constant 0 : index
    %c0_4 = arith.constant 0 : index
    %2 = vector.load %arg4[%c0_3, %c0_4] : memref<32x32xf32, #tpu.memory_space<vmem>>, vector<32x32xf32>
    %cst = arith.constant dense<0.000000e+00> : vector<16x32xf32>
    %3 = tpu.matmul %0, %2, %cst {dimension_numbers = #tpu.dot_dimension_numbers<[1], [0], [0], [1], [0, 0, 1, 1], [], []>} : vector<16x32xf32>, vector<32x32xf32>, vector<16x32xf32> -> vector<16x32xf32>
    %c0_5 = arith.constant 0 : index
    %c0_6 = arith.constant 0 : index
    %4 = vector.load %arg5[%c0_5, %c0_6] : memref<32x32xf32, #tpu.memory_space<vmem>>, vector<32x32xf32>
    %cst_7 = arith.constant dense<0.000000e+00> : vector<16x32xf32>
    %5 = tpu.matmul %1, %4, %cst_7 {dimension_numbers = #tpu.dot_dimension_numbers<[1], [0], [0], [1], [0, 0, 1, 1], [], []>} : vector<16x32xf32>, vector<32x32xf32>, vector<16x32xf32> -> vector<16x32xf32>
    %6 = arith.addf %3, %5 : vector<16x32xf32>
    %c0_8 = arith.constant 0 : index
    %c0_9 = arith.constant 0 : index
    %7 = vector.load %arg7[%c0_8, %c0_9] : memref<1x32xf32, #tpu.memory_space<vmem>>, vector<1x32xf32>
    %8 = vector.broadcast %7 : vector<1x32xf32> to vector<16x32xf32>
    %9 = arith.addf %6, %8 : vector<16x32xf32>
    %c0_10 = arith.constant 0 : index
    %c0_11 = arith.constant 0 : index
    %10 = vector.load %arg5[%c0_10, %c0_11] : memref<32x32xf32, #tpu.memory_space<vmem>>, vector<32x32xf32>
    %c0_12 = arith.constant 0 : index
    %c0_13 = arith.constant 0 : index
    %11 = vector.load %arg6[%c0_12, %c0_13] : memref<4x32xf32, #tpu.memory_space<vmem>>, vector<4x32xf32>
    %c0_14 = arith.constant 0 : index
    %c0_15 = arith.constant 0 : index
    %12 = vector.load %arg8[%c0_14, %c0_15] : memref<32x32xf32, #tpu.memory_space<vmem>>, vector<32x32xf32>
    %c0_16 = arith.constant 0 : index
    %c0_17 = arith.constant 0 : index
    %13 = vector.load %arg9[%c0_16, %c0_17] : memref<1x32xf32, #tpu.memory_space<vmem>>, vector<1x32xf32>
    %c0_18 = arith.constant 0 : index
    %c0_19 = arith.constant 0 : index
    %14 = vector.load %arg10[%c0_18, %c0_19] : memref<32x8xf32, #tpu.memory_space<vmem>>, vector<32x8xf32>
    %c0_20 = arith.constant 0 : index
    %c0_21 = arith.constant 0 : index
    %15 = vector.load %arg11[%c0_20, %c0_21] : memref<1x8xf32, #tpu.memory_space<vmem>>, vector<1x8xf32>
    %16 = vector.extract_strided_slice %1 {offsets = [0, 0], sizes = [16, 8], strides = [1, 1]} : vector<16x32xf32> to vector<16x8xf32>
    %17 = vector.extract_strided_slice %10 {offsets = [0, 0], sizes = [8, 32], strides = [1, 1]} : vector<32x32xf32> to vector<8x32xf32>
    %cst_22 = arith.constant dense<0.000000e+00> : vector<16x32xf32>
    %18 = tpu.matmul %16, %17, %cst_22 {dimension_numbers = #tpu.dot_dimension_numbers<[1], [0], [0], [1], [0, 0, 1, 1], [], []>} : vector<16x8xf32>, vector<8x32xf32>, vector<16x32xf32> -> vector<16x32xf32>
    %19 = arith.subf %9, %18 : vector<16x32xf32>
    %20 = vector.extract_strided_slice %11 {offsets = [0, 0], sizes = [1, 32], strides = [1, 1]} : vector<4x32xf32> to vector<1x32xf32>
    %21 = vector.broadcast %20 : vector<1x32xf32> to vector<16x32xf32>
    %22 = arith.addf %19, %21 : vector<16x32xf32>
    %cst_23 = arith.constant 5.000000e-01 : f32
    %23 = vector.broadcast %cst_23 : f32 to vector<16x32xf32>
    %24 = arith.mulf %23, %22 : vector<16x32xf32>
    %cst_24 = arith.constant 0.707106769 : f32
    %25 = vector.broadcast %cst_24 : f32 to vector<16x32xf32>
    %26 = arith.mulf %22, %25 : vector<16x32xf32>
    %27 = math.absf %26 : vector<16x32xf32>
    %cst_25 = arith.constant 0.327591091 : f32
    %28 = vector.broadcast %cst_25 : f32 to vector<16x32xf32>
    %29 = arith.mulf %28, %27 : vector<16x32xf32>
    %cst_26 = arith.constant 1.000000e+00 : f32
    %30 = vector.broadcast %cst_26 : f32 to vector<16x32xf32>
    %31 = arith.addf %30, %29 : vector<16x32xf32>
    %cst_27 = arith.constant 1.000000e+00 : f32
    %32 = vector.broadcast %cst_27 : f32 to vector<16x32xf32>
    %33 = arith.divf %32, %31 : vector<16x32xf32>
    %cst_28 = arith.constant 1.06140542 : f32
    %34 = vector.broadcast %cst_28 : f32 to vector<16x32xf32>
    %35 = arith.mulf %34, %33 : vector<16x32xf32>
    %cst_29 = arith.constant -1.45315206 : f32
    %36 = vector.broadcast %cst_29 : f32 to vector<16x32xf32>
    %37 = arith.addf %35, %36 : vector<16x32xf32>
    %38 = arith.mulf %37, %33 : vector<16x32xf32>
    %cst_30 = arith.constant 1.42141378 : f32
    %39 = vector.broadcast %cst_30 : f32 to vector<16x32xf32>
    %40 = arith.addf %38, %39 : vector<16x32xf32>
    %41 = arith.mulf %40, %33 : vector<16x32xf32>
    %cst_31 = arith.constant -0.284496725 : f32
    %42 = vector.broadcast %cst_31 : f32 to vector<16x32xf32>
    %43 = arith.addf %41, %42 : vector<16x32xf32>
    %44 = arith.mulf %43, %33 : vector<16x32xf32>
    %cst_32 = arith.constant 0.254829586 : f32
    %45 = vector.broadcast %cst_32 : f32 to vector<16x32xf32>
    %46 = arith.addf %44, %45 : vector<16x32xf32>
    %47 = arith.mulf %46, %33 : vector<16x32xf32>
    %cst_33 = arith.constant 0.000000e+00 : f32
    %48 = vector.broadcast %cst_33 : f32 to vector<16x32xf32>
    %49 = arith.subf %48, %27 : vector<16x32xf32>
    %50 = arith.mulf %49, %27 : vector<16x32xf32>
    %51 = math.exp %50 : vector<16x32xf32>
    %52 = arith.mulf %47, %51 : vector<16x32xf32>
    %cst_34 = arith.constant 1.000000e+00 : f32
    %53 = vector.broadcast %cst_34 : f32 to vector<16x32xf32>
    %54 = arith.subf %53, %52 : vector<16x32xf32>
    %cst_35 = arith.constant 0.000000e+00 : f32
    %55 = vector.broadcast %cst_35 : f32 to vector<16x32xf32>
    %56 = arith.cmpf olt, %26, %55 : vector<16x32xf32>
    %cst_36 = arith.constant 0.000000e+00 : f32
    %57 = vector.broadcast %cst_36 : f32 to vector<16x32xf32>
    %58 = arith.subf %57, %54 : vector<16x32xf32>
    %59 = arith.select %56, %58, %54 : vector<16x32xi1>, vector<16x32xf32>
    %cst_37 = arith.constant 1.000000e+00 : f32
    %60 = vector.broadcast %cst_37 : f32 to vector<16x32xf32>
    %61 = arith.addf %60, %59 : vector<16x32xf32>
    %62 = arith.mulf %24, %61 : vector<16x32xf32>
    %cst_38 = arith.constant dense<0.000000e+00> : vector<16x32xf32>
    %63 = tpu.matmul %62, %12, %cst_38 {dimension_numbers = #tpu.dot_dimension_numbers<[1], [0], [0], [1], [0, 0, 1, 1], [], []>} : vector<16x32xf32>, vector<32x32xf32>, vector<16x32xf32> -> vector<16x32xf32>
    %64 = vector.broadcast %13 : vector<1x32xf32> to vector<16x32xf32>
    %65 = arith.addf %63, %64 : vector<16x32xf32>
    %cst_39 = arith.constant 5.000000e-01 : f32
    %66 = vector.broadcast %cst_39 : f32 to vector<16x32xf32>
    %67 = arith.mulf %66, %65 : vector<16x32xf32>
    %cst_40 = arith.constant 0.707106769 : f32
    %68 = vector.broadcast %cst_40 : f32 to vector<16x32xf32>
    %69 = arith.mulf %65, %68 : vector<16x32xf32>
    %70 = math.absf %69 : vector<16x32xf32>
    %cst_41 = arith.constant 0.327591091 : f32
    %71 = vector.broadcast %cst_41 : f32 to vector<16x32xf32>
    %72 = arith.mulf %71, %70 : vector<16x32xf32>
    %cst_42 = arith.constant 1.000000e+00 : f32
    %73 = vector.broadcast %cst_42 : f32 to vector<16x32xf32>
    %74 = arith.addf %73, %72 : vector<16x32xf32>
    %cst_43 = arith.constant 1.000000e+00 : f32
    %75 = vector.broadcast %cst_43 : f32 to vector<16x32xf32>
    %76 = arith.divf %75, %74 : vector<16x32xf32>
    %cst_44 = arith.constant 1.06140542 : f32
    %77 = vector.broadcast %cst_44 : f32 to vector<16x32xf32>
    %78 = arith.mulf %77, %76 : vector<16x32xf32>
    %cst_45 = arith.constant -1.45315206 : f32
    %79 = vector.broadcast %cst_45 : f32 to vector<16x32xf32>
    %80 = arith.addf %78, %79 : vector<16x32xf32>
    %81 = arith.mulf %80, %76 : vector<16x32xf32>
    %cst_46 = arith.constant 1.42141378 : f32
    %82 = vector.broadcast %cst_46 : f32 to vector<16x32xf32>
    %83 = arith.addf %81, %82 : vector<16x32xf32>
    %84 = arith.mulf %83, %76 : vector<16x32xf32>
    %cst_47 = arith.constant -0.284496725 : f32
    %85 = vector.broadcast %cst_47 : f32 to vector<16x32xf32>
    %86 = arith.addf %84, %85 : vector<16x32xf32>
    %87 = arith.mulf %86, %76 : vector<16x32xf32>
    %cst_48 = arith.constant 0.254829586 : f32
    %88 = vector.broadcast %cst_48 : f32 to vector<16x32xf32>
    %89 = arith.addf %87, %88 : vector<16x32xf32>
    %90 = arith.mulf %89, %76 : vector<16x32xf32>
    %cst_49 = arith.constant 0.000000e+00 : f32
    %91 = vector.broadcast %cst_49 : f32 to vector<16x32xf32>
    %92 = arith.subf %91, %70 : vector<16x32xf32>
    %93 = arith.mulf %92, %70 : vector<16x32xf32>
    %94 = math.exp %93 : vector<16x32xf32>
    %95 = arith.mulf %90, %94 : vector<16x32xf32>
    %cst_50 = arith.constant 1.000000e+00 : f32
    %96 = vector.broadcast %cst_50 : f32 to vector<16x32xf32>
    %97 = arith.subf %96, %95 : vector<16x32xf32>
    %cst_51 = arith.constant 0.000000e+00 : f32
    %98 = vector.broadcast %cst_51 : f32 to vector<16x32xf32>
    %99 = arith.cmpf olt, %69, %98 : vector<16x32xf32>
    %cst_52 = arith.constant 0.000000e+00 : f32
    %100 = vector.broadcast %cst_52 : f32 to vector<16x32xf32>
    %101 = arith.subf %100, %97 : vector<16x32xf32>
    %102 = arith.select %99, %101, %97 : vector<16x32xi1>, vector<16x32xf32>
    %cst_53 = arith.constant 1.000000e+00 : f32
    %103 = vector.broadcast %cst_53 : f32 to vector<16x32xf32>
    %104 = arith.addf %103, %102 : vector<16x32xf32>
    %105 = arith.mulf %67, %104 : vector<16x32xf32>
    %cst_54 = arith.constant dense<0.000000e+00> : vector<16x8xf32>
    %106 = tpu.matmul %105, %14, %cst_54 {dimension_numbers = #tpu.dot_dimension_numbers<[1], [0], [0], [1], [0, 0, 1, 1], [], []>} : vector<16x32xf32>, vector<32x8xf32>, vector<16x8xf32> -> vector<16x8xf32>
    %107 = vector.broadcast %15 : vector<1x8xf32> to vector<16x8xf32>
    %108 = arith.addf %106, %107 : vector<16x8xf32>
    %109 = vector.extract_strided_slice %1 {offsets = [0, 8], sizes = [16, 8], strides = [1, 1]} : vector<16x32xf32> to vector<16x8xf32>
    %110 = vector.extract_strided_slice %10 {offsets = [8, 0], sizes = [8, 32], strides = [1, 1]} : vector<32x32xf32> to vector<8x32xf32>
    %cst_55 = arith.constant dense<0.000000e+00> : vector<16x32xf32>
    %111 = tpu.matmul %109, %110, %cst_55 {dimension_numbers = #tpu.dot_dimension_numbers<[1], [0], [0], [1], [0, 0, 1, 1], [], []>} : vector<16x8xf32>, vector<8x32xf32>, vector<16x32xf32> -> vector<16x32xf32>
    %112 = arith.subf %9, %111 : vector<16x32xf32>
    %113 = vector.extract_strided_slice %11 {offsets = [1, 0], sizes = [1, 32], strides = [1, 1]} : vector<4x32xf32> to vector<1x32xf32>
    %114 = vector.broadcast %113 : vector<1x32xf32> to vector<16x32xf32>
    %115 = arith.addf %112, %114 : vector<16x32xf32>
    %cst_56 = arith.constant 5.000000e-01 : f32
    %116 = vector.broadcast %cst_56 : f32 to vector<16x32xf32>
    %117 = arith.mulf %116, %115 : vector<16x32xf32>
    %cst_57 = arith.constant 0.707106769 : f32
    %118 = vector.broadcast %cst_57 : f32 to vector<16x32xf32>
    %119 = arith.mulf %115, %118 : vector<16x32xf32>
    %120 = math.absf %119 : vector<16x32xf32>
    %cst_58 = arith.constant 0.327591091 : f32
    %121 = vector.broadcast %cst_58 : f32 to vector<16x32xf32>
    %122 = arith.mulf %121, %120 : vector<16x32xf32>
    %cst_59 = arith.constant 1.000000e+00 : f32
    %123 = vector.broadcast %cst_59 : f32 to vector<16x32xf32>
    %124 = arith.addf %123, %122 : vector<16x32xf32>
    %cst_60 = arith.constant 1.000000e+00 : f32
    %125 = vector.broadcast %cst_60 : f32 to vector<16x32xf32>
    %126 = arith.divf %125, %124 : vector<16x32xf32>
    %cst_61 = arith.constant 1.06140542 : f32
    %127 = vector.broadcast %cst_61 : f32 to vector<16x32xf32>
    %128 = arith.mulf %127, %126 : vector<16x32xf32>
    %cst_62 = arith.constant -1.45315206 : f32
    %129 = vector.broadcast %cst_62 : f32 to vector<16x32xf32>
    %130 = arith.addf %128, %129 : vector<16x32xf32>
    %131 = arith.mulf %130, %126 : vector<16x32xf32>
    %cst_63 = arith.constant 1.42141378 : f32
    %132 = vector.broadcast %cst_63 : f32 to vector<16x32xf32>
    %133 = arith.addf %131, %132 : vector<16x32xf32>
    %134 = arith.mulf %133, %126 : vector<16x32xf32>
    %cst_64 = arith.constant -0.284496725 : f32
    %135 = vector.broadcast %cst_64 : f32 to vector<16x32xf32>
    %136 = arith.addf %134, %135 : vector<16x32xf32>
    %137 = arith.mulf %136, %126 : vector<16x32xf32>
    %cst_65 = arith.constant 0.254829586 : f32
    %138 = vector.broadcast %cst_65 : f32 to vector<16x32xf32>
    %139 = arith.addf %137, %138 : vector<16x32xf32>
    %140 = arith.mulf %139, %126 : vector<16x32xf32>
    %cst_66 = arith.constant 0.000000e+00 : f32
    %141 = vector.broadcast %cst_66 : f32 to vector<16x32xf32>
    %142 = arith.subf %141, %120 : vector<16x32xf32>
    %143 = arith.mulf %142, %120 : vector<16x32xf32>
    %144 = math.exp %143 : vector<16x32xf32>
    %145 = arith.mulf %140, %144 : vector<16x32xf32>
    %cst_67 = arith.constant 1.000000e+00 : f32
    %146 = vector.broadcast %cst_67 : f32 to vector<16x32xf32>
    %147 = arith.subf %146, %145 : vector<16x32xf32>
    %cst_68 = arith.constant 0.000000e+00 : f32
    %148 = vector.broadcast %cst_68 : f32 to vector<16x32xf32>
    %149 = arith.cmpf olt, %119, %148 : vector<16x32xf32>
    %cst_69 = arith.constant 0.000000e+00 : f32
    %150 = vector.broadcast %cst_69 : f32 to vector<16x32xf32>
    %151 = arith.subf %150, %147 : vector<16x32xf32>
    %152 = arith.select %149, %151, %147 : vector<16x32xi1>, vector<16x32xf32>
    %cst_70 = arith.constant 1.000000e+00 : f32
    %153 = vector.broadcast %cst_70 : f32 to vector<16x32xf32>
    %154 = arith.addf %153, %152 : vector<16x32xf32>
    %155 = arith.mulf %117, %154 : vector<16x32xf32>
    %cst_71 = arith.constant dense<0.000000e+00> : vector<16x32xf32>
    %156 = tpu.matmul %155, %12, %cst_71 {dimension_numbers = #tpu.dot_dimension_numbers<[1], [0], [0], [1], [0, 0, 1, 1], [], []>} : vector<16x32xf32>, vector<32x32xf32>, vector<16x32xf32> -> vector<16x32xf32>
    %157 = vector.broadcast %13 : vector<1x32xf32> to vector<16x32xf32>
    %158 = arith.addf %156, %157 : vector<16x32xf32>
    %cst_72 = arith.constant 5.000000e-01 : f32
    %159 = vector.broadcast %cst_72 : f32 to vector<16x32xf32>
    %160 = arith.mulf %159, %158 : vector<16x32xf32>
    %cst_73 = arith.constant 0.707106769 : f32
    %161 = vector.broadcast %cst_73 : f32 to vector<16x32xf32>
    %162 = arith.mulf %158, %161 : vector<16x32xf32>
    %163 = math.absf %162 : vector<16x32xf32>
    %cst_74 = arith.constant 0.327591091 : f32
    %164 = vector.broadcast %cst_74 : f32 to vector<16x32xf32>
    %165 = arith.mulf %164, %163 : vector<16x32xf32>
    %cst_75 = arith.constant 1.000000e+00 : f32
    %166 = vector.broadcast %cst_75 : f32 to vector<16x32xf32>
    %167 = arith.addf %166, %165 : vector<16x32xf32>
    %cst_76 = arith.constant 1.000000e+00 : f32
    %168 = vector.broadcast %cst_76 : f32 to vector<16x32xf32>
    %169 = arith.divf %168, %167 : vector<16x32xf32>
    %cst_77 = arith.constant 1.06140542 : f32
    %170 = vector.broadcast %cst_77 : f32 to vector<16x32xf32>
    %171 = arith.mulf %170, %169 : vector<16x32xf32>
    %cst_78 = arith.constant -1.45315206 : f32
    %172 = vector.broadcast %cst_78 : f32 to vector<16x32xf32>
    %173 = arith.addf %171, %172 : vector<16x32xf32>
    %174 = arith.mulf %173, %169 : vector<16x32xf32>
    %cst_79 = arith.constant 1.42141378 : f32
    %175 = vector.broadcast %cst_79 : f32 to vector<16x32xf32>
    %176 = arith.addf %174, %175 : vector<16x32xf32>
    %177 = arith.mulf %176, %169 : vector<16x32xf32>
    %cst_80 = arith.constant -0.284496725 : f32
    %178 = vector.broadcast %cst_80 : f32 to vector<16x32xf32>
    %179 = arith.addf %177, %178 : vector<16x32xf32>
    %180 = arith.mulf %179, %169 : vector<16x32xf32>
    %cst_81 = arith.constant 0.254829586 : f32
    %181 = vector.broadcast %cst_81 : f32 to vector<16x32xf32>
    %182 = arith.addf %180, %181 : vector<16x32xf32>
    %183 = arith.mulf %182, %169 : vector<16x32xf32>
    %cst_82 = arith.constant 0.000000e+00 : f32
    %184 = vector.broadcast %cst_82 : f32 to vector<16x32xf32>
    %185 = arith.subf %184, %163 : vector<16x32xf32>
    %186 = arith.mulf %185, %163 : vector<16x32xf32>
    %187 = math.exp %186 : vector<16x32xf32>
    %188 = arith.mulf %183, %187 : vector<16x32xf32>
    %cst_83 = arith.constant 1.000000e+00 : f32
    %189 = vector.broadcast %cst_83 : f32 to vector<16x32xf32>
    %190 = arith.subf %189, %188 : vector<16x32xf32>
    %cst_84 = arith.constant 0.000000e+00 : f32
    %191 = vector.broadcast %cst_84 : f32 to vector<16x32xf32>
    %192 = arith.cmpf olt, %162, %191 : vector<16x32xf32>
    %cst_85 = arith.constant 0.000000e+00 : f32
    %193 = vector.broadcast %cst_85 : f32 to vector<16x32xf32>
    %194 = arith.subf %193, %190 : vector<16x32xf32>
    %195 = arith.select %192, %194, %190 : vector<16x32xi1>, vector<16x32xf32>
    %cst_86 = arith.constant 1.000000e+00 : f32
    %196 = vector.broadcast %cst_86 : f32 to vector<16x32xf32>
    %197 = arith.addf %196, %195 : vector<16x32xf32>
    %198 = arith.mulf %160, %197 : vector<16x32xf32>
    %cst_87 = arith.constant dense<0.000000e+00> : vector<16x8xf32>
    %199 = tpu.matmul %198, %14, %cst_87 {dimension_numbers = #tpu.dot_dimension_numbers<[1], [0], [0], [1], [0, 0, 1, 1], [], []>} : vector<16x32xf32>, vector<32x8xf32>, vector<16x8xf32> -> vector<16x8xf32>
    %200 = vector.broadcast %15 : vector<1x8xf32> to vector<16x8xf32>
    %201 = arith.addf %199, %200 : vector<16x8xf32>
    %202 = vector.extract_strided_slice %1 {offsets = [0, 16], sizes = [16, 8], strides = [1, 1]} : vector<16x32xf32> to vector<16x8xf32>
    %203 = vector.extract_strided_slice %10 {offsets = [16, 0], sizes = [8, 32], strides = [1, 1]} : vector<32x32xf32> to vector<8x32xf32>
    %cst_88 = arith.constant dense<0.000000e+00> : vector<16x32xf32>
    %204 = tpu.matmul %202, %203, %cst_88 {dimension_numbers = #tpu.dot_dimension_numbers<[1], [0], [0], [1], [0, 0, 1, 1], [], []>} : vector<16x8xf32>, vector<8x32xf32>, vector<16x32xf32> -> vector<16x32xf32>
    %205 = arith.subf %9, %204 : vector<16x32xf32>
    %206 = vector.extract_strided_slice %11 {offsets = [2, 0], sizes = [1, 32], strides = [1, 1]} : vector<4x32xf32> to vector<1x32xf32>
    %207 = vector.broadcast %206 : vector<1x32xf32> to vector<16x32xf32>
    %208 = arith.addf %205, %207 : vector<16x32xf32>
    %cst_89 = arith.constant 5.000000e-01 : f32
    %209 = vector.broadcast %cst_89 : f32 to vector<16x32xf32>
    %210 = arith.mulf %209, %208 : vector<16x32xf32>
    %cst_90 = arith.constant 0.707106769 : f32
    %211 = vector.broadcast %cst_90 : f32 to vector<16x32xf32>
    %212 = arith.mulf %208, %211 : vector<16x32xf32>
    %213 = math.absf %212 : vector<16x32xf32>
    %cst_91 = arith.constant 0.327591091 : f32
    %214 = vector.broadcast %cst_91 : f32 to vector<16x32xf32>
    %215 = arith.mulf %214, %213 : vector<16x32xf32>
    %cst_92 = arith.constant 1.000000e+00 : f32
    %216 = vector.broadcast %cst_92 : f32 to vector<16x32xf32>
    %217 = arith.addf %216, %215 : vector<16x32xf32>
    %cst_93 = arith.constant 1.000000e+00 : f32
    %218 = vector.broadcast %cst_93 : f32 to vector<16x32xf32>
    %219 = arith.divf %218, %217 : vector<16x32xf32>
    %cst_94 = arith.constant 1.06140542 : f32
    %220 = vector.broadcast %cst_94 : f32 to vector<16x32xf32>
    %221 = arith.mulf %220, %219 : vector<16x32xf32>
    %cst_95 = arith.constant -1.45315206 : f32
    %222 = vector.broadcast %cst_95 : f32 to vector<16x32xf32>
    %223 = arith.addf %221, %222 : vector<16x32xf32>
    %224 = arith.mulf %223, %219 : vector<16x32xf32>
    %cst_96 = arith.constant 1.42141378 : f32
    %225 = vector.broadcast %cst_96 : f32 to vector<16x32xf32>
    %226 = arith.addf %224, %225 : vector<16x32xf32>
    %227 = arith.mulf %226, %219 : vector<16x32xf32>
    %cst_97 = arith.constant -0.284496725 : f32
    %228 = vector.broadcast %cst_97 : f32 to vector<16x32xf32>
    %229 = arith.addf %227, %228 : vector<16x32xf32>
    %230 = arith.mulf %229, %219 : vector<16x32xf32>
    %cst_98 = arith.constant 0.254829586 : f32
    %231 = vector.broadcast %cst_98 : f32 to vector<16x32xf32>
    %232 = arith.addf %230, %231 : vector<16x32xf32>
    %233 = arith.mulf %232, %219 : vector<16x32xf32>
    %cst_99 = arith.constant 0.000000e+00 : f32
    %234 = vector.broadcast %cst_99 : f32 to vector<16x32xf32>
    %235 = arith.subf %234, %213 : vector<16x32xf32>
    %236 = arith.mulf %235, %213 : vector<16x32xf32>
    %237 = math.exp %236 : vector<16x32xf32>
    %238 = arith.mulf %233, %237 : vector<16x32xf32>
    %cst_100 = arith.constant 1.000000e+00 : f32
    %239 = vector.broadcast %cst_100 : f32 to vector<16x32xf32>
    %240 = arith.subf %239, %238 : vector<16x32xf32>
    %cst_101 = arith.constant 0.000000e+00 : f32
    %241 = vector.broadcast %cst_101 : f32 to vector<16x32xf32>
    %242 = arith.cmpf olt, %212, %241 : vector<16x32xf32>
    %cst_102 = arith.constant 0.000000e+00 : f32
    %243 = vector.broadcast %cst_102 : f32 to vector<16x32xf32>
    %244 = arith.subf %243, %240 : vector<16x32xf32>
    %245 = arith.select %242, %244, %240 : vector<16x32xi1>, vector<16x32xf32>
    %cst_103 = arith.constant 1.000000e+00 : f32
    %246 = vector.broadcast %cst_103 : f32 to vector<16x32xf32>
    %247 = arith.addf %246, %245 : vector<16x32xf32>
    %248 = arith.mulf %210, %247 : vector<16x32xf32>
    %cst_104 = arith.constant dense<0.000000e+00> : vector<16x32xf32>
    %249 = tpu.matmul %248, %12, %cst_104 {dimension_numbers = #tpu.dot_dimension_numbers<[1], [0], [0], [1], [0, 0, 1, 1], [], []>} : vector<16x32xf32>, vector<32x32xf32>, vector<16x32xf32> -> vector<16x32xf32>
    %250 = vector.broadcast %13 : vector<1x32xf32> to vector<16x32xf32>
    %251 = arith.addf %249, %250 : vector<16x32xf32>
    %cst_105 = arith.constant 5.000000e-01 : f32
    %252 = vector.broadcast %cst_105 : f32 to vector<16x32xf32>
    %253 = arith.mulf %252, %251 : vector<16x32xf32>
    %cst_106 = arith.constant 0.707106769 : f32
    %254 = vector.broadcast %cst_106 : f32 to vector<16x32xf32>
    %255 = arith.mulf %251, %254 : vector<16x32xf32>
    %256 = math.absf %255 : vector<16x32xf32>
    %cst_107 = arith.constant 0.327591091 : f32
    %257 = vector.broadcast %cst_107 : f32 to vector<16x32xf32>
    %258 = arith.mulf %257, %256 : vector<16x32xf32>
    %cst_108 = arith.constant 1.000000e+00 : f32
    %259 = vector.broadcast %cst_108 : f32 to vector<16x32xf32>
    %260 = arith.addf %259, %258 : vector<16x32xf32>
    %cst_109 = arith.constant 1.000000e+00 : f32
    %261 = vector.broadcast %cst_109 : f32 to vector<16x32xf32>
    %262 = arith.divf %261, %260 : vector<16x32xf32>
    %cst_110 = arith.constant 1.06140542 : f32
    %263 = vector.broadcast %cst_110 : f32 to vector<16x32xf32>
    %264 = arith.mulf %263, %262 : vector<16x32xf32>
    %cst_111 = arith.constant -1.45315206 : f32
    %265 = vector.broadcast %cst_111 : f32 to vector<16x32xf32>
    %266 = arith.addf %264, %265 : vector<16x32xf32>
    %267 = arith.mulf %266, %262 : vector<16x32xf32>
    %cst_112 = arith.constant 1.42141378 : f32
    %268 = vector.broadcast %cst_112 : f32 to vector<16x32xf32>
    %269 = arith.addf %267, %268 : vector<16x32xf32>
    %270 = arith.mulf %269, %262 : vector<16x32xf32>
    %cst_113 = arith.constant -0.284496725 : f32
    %271 = vector.broadcast %cst_113 : f32 to vector<16x32xf32>
    %272 = arith.addf %270, %271 : vector<16x32xf32>
    %273 = arith.mulf %272, %262 : vector<16x32xf32>
    %cst_114 = arith.constant 0.254829586 : f32
    %274 = vector.broadcast %cst_114 : f32 to vector<16x32xf32>
    %275 = arith.addf %273, %274 : vector<16x32xf32>
    %276 = arith.mulf %275, %262 : vector<16x32xf32>
    %cst_115 = arith.constant 0.000000e+00 : f32
    %277 = vector.broadcast %cst_115 : f32 to vector<16x32xf32>
    %278 = arith.subf %277, %256 : vector<16x32xf32>
    %279 = arith.mulf %278, %256 : vector<16x32xf32>
    %280 = math.exp %279 : vector<16x32xf32>
    %281 = arith.mulf %276, %280 : vector<16x32xf32>
    %cst_116 = arith.constant 1.000000e+00 : f32
    %282 = vector.broadcast %cst_116 : f32 to vector<16x32xf32>
    %283 = arith.subf %282, %281 : vector<16x32xf32>
    %cst_117 = arith.constant 0.000000e+00 : f32
    %284 = vector.broadcast %cst_117 : f32 to vector<16x32xf32>
    %285 = arith.cmpf olt, %255, %284 : vector<16x32xf32>
    %cst_118 = arith.constant 0.000000e+00 : f32
    %286 = vector.broadcast %cst_118 : f32 to vector<16x32xf32>
    %287 = arith.subf %286, %283 : vector<16x32xf32>
    %288 = arith.select %285, %287, %283 : vector<16x32xi1>, vector<16x32xf32>
    %cst_119 = arith.constant 1.000000e+00 : f32
    %289 = vector.broadcast %cst_119 : f32 to vector<16x32xf32>
    %290 = arith.addf %289, %288 : vector<16x32xf32>
    %291 = arith.mulf %253, %290 : vector<16x32xf32>
    %cst_120 = arith.constant dense<0.000000e+00> : vector<16x8xf32>
    %292 = tpu.matmul %291, %14, %cst_120 {dimension_numbers = #tpu.dot_dimension_numbers<[1], [0], [0], [1], [0, 0, 1, 1], [], []>} : vector<16x32xf32>, vector<32x8xf32>, vector<16x8xf32> -> vector<16x8xf32>
    %293 = vector.broadcast %15 : vector<1x8xf32> to vector<16x8xf32>
    %294 = arith.addf %292, %293 : vector<16x8xf32>
    %295 = vector.extract_strided_slice %1 {offsets = [0, 24], sizes = [16, 8], strides = [1, 1]} : vector<16x32xf32> to vector<16x8xf32>
    %296 = vector.extract_strided_slice %10 {offsets = [24, 0], sizes = [8, 32], strides = [1, 1]} : vector<32x32xf32> to vector<8x32xf32>
    %cst_121 = arith.constant dense<0.000000e+00> : vector<16x32xf32>
    %297 = tpu.matmul %295, %296, %cst_121 {dimension_numbers = #tpu.dot_dimension_numbers<[1], [0], [0], [1], [0, 0, 1, 1], [], []>} : vector<16x8xf32>, vector<8x32xf32>, vector<16x32xf32> -> vector<16x32xf32>
    %298 = arith.subf %9, %297 : vector<16x32xf32>
    %299 = vector.extract_strided_slice %11 {offsets = [3, 0], sizes = [1, 32], strides = [1, 1]} : vector<4x32xf32> to vector<1x32xf32>
    %300 = vector.broadcast %299 : vector<1x32xf32> to vector<16x32xf32>
    %301 = arith.addf %298, %300 : vector<16x32xf32>
    %cst_122 = arith.constant 5.000000e-01 : f32
    %302 = vector.broadcast %cst_122 : f32 to vector<16x32xf32>
    %303 = arith.mulf %302, %301 : vector<16x32xf32>
    %cst_123 = arith.constant 0.707106769 : f32
    %304 = vector.broadcast %cst_123 : f32 to vector<16x32xf32>
    %305 = arith.mulf %301, %304 : vector<16x32xf32>
    %306 = math.absf %305 : vector<16x32xf32>
    %cst_124 = arith.constant 0.327591091 : f32
    %307 = vector.broadcast %cst_124 : f32 to vector<16x32xf32>
    %308 = arith.mulf %307, %306 : vector<16x32xf32>
    %cst_125 = arith.constant 1.000000e+00 : f32
    %309 = vector.broadcast %cst_125 : f32 to vector<16x32xf32>
    %310 = arith.addf %309, %308 : vector<16x32xf32>
    %cst_126 = arith.constant 1.000000e+00 : f32
    %311 = vector.broadcast %cst_126 : f32 to vector<16x32xf32>
    %312 = arith.divf %311, %310 : vector<16x32xf32>
    %cst_127 = arith.constant 1.06140542 : f32
    %313 = vector.broadcast %cst_127 : f32 to vector<16x32xf32>
    %314 = arith.mulf %313, %312 : vector<16x32xf32>
    %cst_128 = arith.constant -1.45315206 : f32
    %315 = vector.broadcast %cst_128 : f32 to vector<16x32xf32>
    %316 = arith.addf %314, %315 : vector<16x32xf32>
    %317 = arith.mulf %316, %312 : vector<16x32xf32>
    %cst_129 = arith.constant 1.42141378 : f32
    %318 = vector.broadcast %cst_129 : f32 to vector<16x32xf32>
    %319 = arith.addf %317, %318 : vector<16x32xf32>
    %320 = arith.mulf %319, %312 : vector<16x32xf32>
    %cst_130 = arith.constant -0.284496725 : f32
    %321 = vector.broadcast %cst_130 : f32 to vector<16x32xf32>
    %322 = arith.addf %320, %321 : vector<16x32xf32>
    %323 = arith.mulf %322, %312 : vector<16x32xf32>
    %cst_131 = arith.constant 0.254829586 : f32
    %324 = vector.broadcast %cst_131 : f32 to vector<16x32xf32>
    %325 = arith.addf %323, %324 : vector<16x32xf32>
    %326 = arith.mulf %325, %312 : vector<16x32xf32>
    %cst_132 = arith.constant 0.000000e+00 : f32
    %327 = vector.broadcast %cst_132 : f32 to vector<16x32xf32>
    %328 = arith.subf %327, %306 : vector<16x32xf32>
    %329 = arith.mulf %328, %306 : vector<16x32xf32>
    %330 = math.exp %329 : vector<16x32xf32>
    %331 = arith.mulf %326, %330 : vector<16x32xf32>
    %cst_133 = arith.constant 1.000000e+00 : f32
    %332 = vector.broadcast %cst_133 : f32 to vector<16x32xf32>
    %333 = arith.subf %332, %331 : vector<16x32xf32>
    %cst_134 = arith.constant 0.000000e+00 : f32
    %334 = vector.broadcast %cst_134 : f32 to vector<16x32xf32>
    %335 = arith.cmpf olt, %305, %334 : vector<16x32xf32>
    %cst_135 = arith.constant 0.000000e+00 : f32
    %336 = vector.broadcast %cst_135 : f32 to vector<16x32xf32>
    %337 = arith.subf %336, %333 : vector<16x32xf32>
    %338 = arith.select %335, %337, %333 : vector<16x32xi1>, vector<16x32xf32>
    %cst_136 = arith.constant 1.000000e+00 : f32
    %339 = vector.broadcast %cst_136 : f32 to vector<16x32xf32>
    %340 = arith.addf %339, %338 : vector<16x32xf32>
    %341 = arith.mulf %303, %340 : vector<16x32xf32>
    %cst_137 = arith.constant dense<0.000000e+00> : vector<16x32xf32>
    %342 = tpu.matmul %341, %12, %cst_137 {dimension_numbers = #tpu.dot_dimension_numbers<[1], [0], [0], [1], [0, 0, 1, 1], [], []>} : vector<16x32xf32>, vector<32x32xf32>, vector<16x32xf32> -> vector<16x32xf32>
    %343 = vector.broadcast %13 : vector<1x32xf32> to vector<16x32xf32>
    %344 = arith.addf %342, %343 : vector<16x32xf32>
    %cst_138 = arith.constant 5.000000e-01 : f32
    %345 = vector.broadcast %cst_138 : f32 to vector<16x32xf32>
    %346 = arith.mulf %345, %344 : vector<16x32xf32>
    %cst_139 = arith.constant 0.707106769 : f32
    %347 = vector.broadcast %cst_139 : f32 to vector<16x32xf32>
    %348 = arith.mulf %344, %347 : vector<16x32xf32>
    %349 = math.absf %348 : vector<16x32xf32>
    %cst_140 = arith.constant 0.327591091 : f32
    %350 = vector.broadcast %cst_140 : f32 to vector<16x32xf32>
    %351 = arith.mulf %350, %349 : vector<16x32xf32>
    %cst_141 = arith.constant 1.000000e+00 : f32
    %352 = vector.broadcast %cst_141 : f32 to vector<16x32xf32>
    %353 = arith.addf %352, %351 : vector<16x32xf32>
    %cst_142 = arith.constant 1.000000e+00 : f32
    %354 = vector.broadcast %cst_142 : f32 to vector<16x32xf32>
    %355 = arith.divf %354, %353 : vector<16x32xf32>
    %cst_143 = arith.constant 1.06140542 : f32
    %356 = vector.broadcast %cst_143 : f32 to vector<16x32xf32>
    %357 = arith.mulf %356, %355 : vector<16x32xf32>
    %cst_144 = arith.constant -1.45315206 : f32
    %358 = vector.broadcast %cst_144 : f32 to vector<16x32xf32>
    %359 = arith.addf %357, %358 : vector<16x32xf32>
    %360 = arith.mulf %359, %355 : vector<16x32xf32>
    %cst_145 = arith.constant 1.42141378 : f32
    %361 = vector.broadcast %cst_145 : f32 to vector<16x32xf32>
    %362 = arith.addf %360, %361 : vector<16x32xf32>
    %363 = arith.mulf %362, %355 : vector<16x32xf32>
    %cst_146 = arith.constant -0.284496725 : f32
    %364 = vector.broadcast %cst_146 : f32 to vector<16x32xf32>
    %365 = arith.addf %363, %364 : vector<16x32xf32>
    %366 = arith.mulf %365, %355 : vector<16x32xf32>
    %cst_147 = arith.constant 0.254829586 : f32
    %367 = vector.broadcast %cst_147 : f32 to vector<16x32xf32>
    %368 = arith.addf %366, %367 : vector<16x32xf32>
    %369 = arith.mulf %368, %355 : vector<16x32xf32>
    %cst_148 = arith.constant 0.000000e+00 : f32
    %370 = vector.broadcast %cst_148 : f32 to vector<16x32xf32>
    %371 = arith.subf %370, %349 : vector<16x32xf32>
    %372 = arith.mulf %371, %349 : vector<16x32xf32>
    %373 = math.exp %372 : vector<16x32xf32>
    %374 = arith.mulf %369, %373 : vector<16x32xf32>
    %cst_149 = arith.constant 1.000000e+00 : f32
    %375 = vector.broadcast %cst_149 : f32 to vector<16x32xf32>
    %376 = arith.subf %375, %374 : vector<16x32xf32>
    %cst_150 = arith.constant 0.000000e+00 : f32
    %377 = vector.broadcast %cst_150 : f32 to vector<16x32xf32>
    %378 = arith.cmpf olt, %348, %377 : vector<16x32xf32>
    %cst_151 = arith.constant 0.000000e+00 : f32
    %379 = vector.broadcast %cst_151 : f32 to vector<16x32xf32>
    %380 = arith.subf %379, %376 : vector<16x32xf32>
    %381 = arith.select %378, %380, %376 : vector<16x32xi1>, vector<16x32xf32>
    %cst_152 = arith.constant 1.000000e+00 : f32
    %382 = vector.broadcast %cst_152 : f32 to vector<16x32xf32>
    %383 = arith.addf %382, %381 : vector<16x32xf32>
    %384 = arith.mulf %346, %383 : vector<16x32xf32>
    %cst_153 = arith.constant dense<0.000000e+00> : vector<16x8xf32>
    %385 = tpu.matmul %384, %14, %cst_153 {dimension_numbers = #tpu.dot_dimension_numbers<[1], [0], [0], [1], [0, 0, 1, 1], [], []>} : vector<16x32xf32>, vector<32x8xf32>, vector<16x8xf32> -> vector<16x8xf32>
    %386 = vector.broadcast %15 : vector<1x8xf32> to vector<16x8xf32>
    %387 = arith.addf %385, %386 : vector<16x8xf32>
    %388 = tpu.concatenate %108, %201, %294, %387 in 1 : vector<16x8xf32>, vector<16x8xf32>, vector<16x8xf32>, vector<16x8xf32> -> vector<16x32xf32>
    %c0_154 = arith.constant 0 : index
    %c0_155 = arith.constant 0 : index
    %389 = vector.load %arg16[%c0_154, %c0_155] : memref<16x32xf32, #tpu.memory_space<vmem>>, vector<16x32xf32>
    tpu.vector_store %arg16[%c0_154, %c0_155], %388 {strides = array<i32>} : memref<16x32xf32, #tpu.memory_space<vmem>>, vector<16x32xf32>,
    %c0_156 = arith.constant 0 : index
    %c0_157 = arith.constant 0 : index
    %390 = vector.load %arg3[%c0_156, %c0_157] : memref<16x32xf32, #tpu.memory_space<vmem>>, vector<16x32xf32>
    %c0_158 = arith.constant 0 : index
    %c0_159 = arith.constant 0 : index
    %391 = vector.load %arg12[%c0_158, %c0_159] : memref<32x32xf32, #tpu.memory_space<vmem>>, vector<32x32xf32>
    %cst_160 = arith.constant dense<0.000000e+00> : vector<16x32xf32>
    %392 = tpu.matmul %390, %391, %cst_160 {dimension_numbers = #tpu.dot_dimension_numbers<[1], [0], [0], [1], [0, 0, 1, 1], [], []>} : vector<16x32xf32>, vector<32x32xf32>, vector<16x32xf32> -> vector<16x32xf32>
    %c0_161 = arith.constant 0 : index
    %c0_162 = arith.constant 0 : index
    %393 = vector.load %arg13[%c0_161, %c0_162] : memref<1x32xf32, #tpu.memory_space<vmem>>, vector<1x32xf32>
    %394 = vector.broadcast %393 : vector<1x32xf32> to vector<16x32xf32>
    %395 = arith.addf %392, %394 : vector<16x32xf32>
    %cst_163 = arith.constant 5.000000e-01 : f32
    %396 = vector.broadcast %cst_163 : f32 to vector<16x32xf32>
    %397 = arith.mulf %396, %395 : vector<16x32xf32>
    %cst_164 = arith.constant 0.707106769 : f32
    %398 = vector.broadcast %cst_164 : f32 to vector<16x32xf32>
    %399 = arith.mulf %395, %398 : vector<16x32xf32>
    %400 = math.absf %399 : vector<16x32xf32>
    %cst_165 = arith.constant 0.327591091 : f32
    %401 = vector.broadcast %cst_165 : f32 to vector<16x32xf32>
    %402 = arith.mulf %401, %400 : vector<16x32xf32>
    %cst_166 = arith.constant 1.000000e+00 : f32
    %403 = vector.broadcast %cst_166 : f32 to vector<16x32xf32>
    %404 = arith.addf %403, %402 : vector<16x32xf32>
    %cst_167 = arith.constant 1.000000e+00 : f32
    %405 = vector.broadcast %cst_167 : f32 to vector<16x32xf32>
    %406 = arith.divf %405, %404 : vector<16x32xf32>
    %cst_168 = arith.constant 1.06140542 : f32
    %407 = vector.broadcast %cst_168 : f32 to vector<16x32xf32>
    %408 = arith.mulf %407, %406 : vector<16x32xf32>
    %cst_169 = arith.constant -1.45315206 : f32
    %409 = vector.broadcast %cst_169 : f32 to vector<16x32xf32>
    %410 = arith.addf %408, %409 : vector<16x32xf32>
    %411 = arith.mulf %410, %406 : vector<16x32xf32>
    %cst_170 = arith.constant 1.42141378 : f32
    %412 = vector.broadcast %cst_170 : f32 to vector<16x32xf32>
    %413 = arith.addf %411, %412 : vector<16x32xf32>
    %414 = arith.mulf %413, %406 : vector<16x32xf32>
    %cst_171 = arith.constant -0.284496725 : f32
    %415 = vector.broadcast %cst_171 : f32 to vector<16x32xf32>
    %416 = arith.addf %414, %415 : vector<16x32xf32>
    %417 = arith.mulf %416, %406 : vector<16x32xf32>
    %cst_172 = arith.constant 0.254829586 : f32
    %418 = vector.broadcast %cst_172 : f32 to vector<16x32xf32>
    %419 = arith.addf %417, %418 : vector<16x32xf32>
    %420 = arith.mulf %419, %406 : vector<16x32xf32>
    %cst_173 = arith.constant 0.000000e+00 : f32
    %421 = vector.broadcast %cst_173 : f32 to vector<16x32xf32>
    %422 = arith.subf %421, %400 : vector<16x32xf32>
    %423 = arith.mulf %422, %400 : vector<16x32xf32>
    %424 = math.exp %423 : vector<16x32xf32>
    %425 = arith.mulf %420, %424 : vector<16x32xf32>
    %cst_174 = arith.constant 1.000000e+00 : f32
    %426 = vector.broadcast %cst_174 : f32 to vector<16x32xf32>
    %427 = arith.subf %426, %425 : vector<16x32xf32>
    %cst_175 = arith.constant 0.000000e+00 : f32
    %428 = vector.broadcast %cst_175 : f32 to vector<16x32xf32>
    %429 = arith.cmpf olt, %399, %428 : vector<16x32xf32>
    %cst_176 = arith.constant 0.000000e+00 : f32
    %430 = vector.broadcast %cst_176 : f32 to vector<16x32xf32>
    %431 = arith.subf %430, %427 : vector<16x32xf32>
    %432 = arith.select %429, %431, %427 : vector<16x32xi1>, vector<16x32xf32>
    %cst_177 = arith.constant 1.000000e+00 : f32
    %433 = vector.broadcast %cst_177 : f32 to vector<16x32xf32>
    %434 = arith.addf %433, %432 : vector<16x32xf32>
    %435 = arith.mulf %397, %434 : vector<16x32xf32>
    %c0_178 = arith.constant 0 : index
    %c0_179 = arith.constant 0 : index
    %436 = vector.load %arg14[%c0_178, %c0_179] : memref<1x32xf32, #tpu.memory_space<vmem>>, vector<1x32xf32>
    %437 = vector.broadcast %436 : vector<1x32xf32> to vector<16x32xf32>
    %438 = arith.mulf %435, %437 : vector<16x32xf32>
    %cst_180 = arith.constant dense<0.000000e+00> : vector<16xf32>
    %439 = vector.multi_reduction <add>, %438, %cst_180 [1] : vector<16x32xf32> to vector<16xf32>
    %440 = vector.shape_cast %439 : vector<16xf32> to vector<16x1xf32>
    %c0_181 = arith.constant 0 : index
    %c0_182 = arith.constant 0 : index
    %441 = vector.load %arg15[%c0_181, %c0_182] : memref<1x1xf32, #tpu.memory_space<vmem>>, vector<1x1xf32>
    %442 = vector.broadcast %441 : vector<1x1xf32> to vector<16x1xf32>
    %443 = arith.addf %440, %442 : vector<16x1xf32>
    %c0_183 = arith.constant 0 : index
    %c0_184 = arith.constant 0 : index
    %444 = vector.load %arg17[%c0_183, %c0_184] : memref<16x1xf32, #tpu.memory_space<vmem>>, vector<16x1xf32>
    tpu.vector_store %arg17[%c0_183, %c0_184], %443 {strides = array<i32>} : memref<16x1xf32, #tpu.memory_space<vmem>>, vector<16x1xf32>,
    return
  }
  func.func @transform_0(%arg0: i32) -> (i32, i32) {
    %c0_i32 = arith.constant 0 : i32
    %c0_i32_0 = arith.constant 0 : i32
    return %arg0, %c0_i32 : i32, i32
  }
  func.func @transform_1(%arg0: i32) -> (i32, i32) {
    %c0_i32 = arith.constant 0 : i32
    %c0_i32_0 = arith.constant 0 : i32
    return %arg0, %c0_i32 : i32, i32
  }
  func.func @transform_2(%arg0: i32) -> (i32, i32) {
    %c0_i32 = arith.constant 0 : i32
    %c0_i32_0 = arith.constant 0 : i32
    return %arg0, %c0_i32 : i32, i32
  }
  func.func @transform_3(%arg0: i32) -> (i32, i32) {
    %c0_i32 = arith.constant 0 : i32
    %c0_i32_0 = arith.constant 0 : i32
    %c0_i32_1 = arith.constant 0 : i32
    return %c0_i32, %c0_i32_0 : i32, i32
  }
  func.func @transform_4(%arg0: i32) -> (i32, i32) {
    %c0_i32 = arith.constant 0 : i32
    %c0_i32_0 = arith.constant 0 : i32
    %c0_i32_1 = arith.constant 0 : i32
    return %c0_i32, %c0_i32_0 : i32, i32
  }
  func.func @transform_5(%arg0: i32) -> (i32, i32) {
    %c0_i32 = arith.constant 0 : i32
    %c0_i32_0 = arith.constant 0 : i32
    %c0_i32_1 = arith.constant 0 : i32
    return %c0_i32, %c0_i32_0 : i32, i32
  }
  func.func @transform_6(%arg0: i32) -> (i32, i32) {
    %c0_i32 = arith.constant 0 : i32
    %c0_i32_0 = arith.constant 0 : i32
    %c0_i32_1 = arith.constant 0 : i32
    return %c0_i32, %c0_i32_0 : i32, i32
  }
  func.func @transform_7(%arg0: i32) -> (i32, i32) {
    %c0_i32 = arith.constant 0 : i32
    %c0_i32_0 = arith.constant 0 : i32
    %c0_i32_1 = arith.constant 0 : i32
    return %c0_i32, %c0_i32_0 : i32, i32
  }
  func.func @transform_8(%arg0: i32) -> (i32, i32) {
    %c0_i32 = arith.constant 0 : i32
    %c0_i32_0 = arith.constant 0 : i32
    %c0_i32_1 = arith.constant 0 : i32
    return %c0_i32, %c0_i32_0 : i32, i32
  }
  func.func @transform_9(%arg0: i32) -> (i32, i32) {
    %c0_i32 = arith.constant 0 : i32
    %c0_i32_0 = arith.constant 0 : i32
    %c0_i32_1 = arith.constant 0 : i32
    return %c0_i32, %c0_i32_0 : i32, i32
  }
  func.func @transform_10(%arg0: i32) -> (i32, i32) {
    %c0_i32 = arith.constant 0 : i32
    %c0_i32_0 = arith.constant 0 : i32
    %c0_i32_1 = arith.constant 0 : i32
    return %c0_i32, %c0_i32_0 : i32, i32
  }
  func.func @transform_11(%arg0: i32) -> (i32, i32) {
    %c0_i32 = arith.constant 0 : i32
    %c0_i32_0 = arith.constant 0 : i32
    %c0_i32_1 = arith.constant 0 : i32
    return %c0_i32, %c0_i32_0 : i32, i32
  }
  func.func @transform_12(%arg0: i32) -> (i32, i32) {
    %c0_i32 = arith.constant 0 : i32
    %c0_i32_0 = arith.constant 0 : i32
    %c0_i32_1 = arith.constant 0 : i32
    return %c0_i32, %c0_i32_0 : i32, i32
  }
  func.func @transform_13(%arg0: i32) -> (i32, i32) {
    %c0_i32 = arith.constant 0 : i32
    %c0_i32_0 = arith.constant 0 : i32
    %c0_i32_1 = arith.constant 0 : i32
    return %c0_i32, %c0_i32_0 : i32, i32
  }
  func.func @transform_14(%arg0: i32) -> (i32, i32) {
    %c0_i32 = arith.constant 0 : i32
    %c0_i32_0 = arith.constant 0 : i32
    %c0_i32_1 = arith.constant 0 : i32
    return %c0_i32, %c0_i32_0 : i32, i32
  }
  func.func @transform_15(%arg0: i32) -> (i32, i32) {
    %c0_i32 = arith.constant 0 : i32
    %c0_i32_0 = arith.constant 0 : i32
    return %arg0, %c0_i32 : i32, i32
  }
  func.func @transform_16(%arg0: i32) -> (i32, i32) {
    %c0_i32 = arith.constant 0 : i32
    %c0_i32_0 = arith.constant 0 : i32
    return %arg0, %c0_i32 : i32, i32
  }
}

</mosaic_0001>

<bundles_post_ra>
// kernel: qtran_alt_forward.1
= control target key start
LH: loop header
LB: loop body
LE: loop exit
PB: predicated region body
PF: predicated region fallthrough
CT: control target
= control target key end

     0   :  { %vm66_vm0 = vcmask 261120   ;;  %s2342_s28 = smov 120   ;;  %vm249_vm1 = vcmask 64512   ;;  %v331_v24 = vlaneseq  ;;  %s2345_s17 = smov 8   ;;  %s2829_s1 = inlined_call_operand.vmem [shape: f32[16,32], index: 1, kind: input, shape index: {}]   ;;  %s2830_s4 = inlined_call_operand.vmem [shape: f32[32,32], index: 4, kind: input, shape index: {}]   ;;  %s2831_s3 = inlined_call_operand.vmem [shape: f32[32,32], index: 3, kind: input, shape index: {}]   ;;  %s2832_s0 = inlined_call_operand.vmem [shape: f32[16,32], index: 0, kind: input, shape index: {}]   ;;  %s2833_s7 = inlined_call_operand.vmem [shape: f32[32,32], index: 7, kind: input, shape index: {}]   ;;  %s2834_s6 = inlined_call_operand.vmem [shape: f32[1,32], index: 6, kind: input, shape index: {}]   ;;  %s2835_s5 = inlined_call_operand.vmem [shape: f32[4,32], index: 5, kind: input, shape index: {}]   ;;  %s2836_s9 = inlined_call_operand.vmem [shape: f32[32,8], index: 9, kind: input, shape index: {}]   ;;  %s2837_s8 = inlined_call_operand.vmem [shape: f32[1,32], index: 8, kind: input, shape index: {}]   ;;  %s2838_s10 = inlined_call_operand.vmem [shape: f32[1,8], index: 10, kind: input, shape index: {}]   ;;  %s2839_s11 = inlined_call_operand.vmem [shape: f32[32,32], index: 11, kind: input, shape index: {}]   ;;  %s2840_s2 = inlined_call_operand.vmem [shape: f32[16,32], index: 2, kind: input, shape index: {}]   ;;  %s2841_s12 = inlined_call_operand.vmem [shape: f32[1,32], index: 12, kind: input, shape index: {}]   ;;  %s2842_s13 = inlined_call_operand.vmem [shape: f32[1,32], index: 13, kind: input, shape index: {}]   ;;  %s2843_s14 = inlined_call_operand.<no memory space> [shape: f32[1,1], index: 14, kind: input, shape index: {}]   ;;  %s2844_s16 = inlined_call_operand.vmem [shape: f32[16,1], index: 16, kind: output, shape index: {1}]   ;;  %s2845_s15 = inlined_call_operand.vmem [shape: f32[16,32], index: 15, kind: output, shape index: {0}]  }
   0x1   :  { %2847 = sst [smem:[#allocation3_spill]] %s2829_s1  ;;  %v62_v1 = vld [vmem:[%s2830_s4] sm:$0xff]  ;;  %v63_v2 = vld [vmem:[%s2830_s4 + $0x8] sm:$0xff]  ;;  %v2448_v4 = vld [vmem:[%s2830_s4 + $0x10] sm:$0xff] }
   0x2   :  { %s2848_s23 = sld [smem:[#allocation3_spill]]  ;;  %v2174_v3 = vpack.c.bf16 %v63_v2, %v62_v1  ;;  %v2453_v5 = vld [vmem:[%s2830_s4 + $0x18] sm:$0xff]  ;;  %v58_v8 = vld [vmem:[%s2831_s3] sm:$0xff]  ;;  %v59_v9 = vld [vmem:[%s2831_s3 + $0x8] sm:$0xff]  ;;  %v2513_v25 = vshrl.u32 %v331_v24, 7 }
   0x3   :  { %v2178_v7 = vpack.c.bf16 %v2453_v5, %v2448_v4  ;;  %v2182_v10 = vpack.c.bf16 %v59_v9, %v58_v8  ;;  %v60_v11 = vld [vmem:[%s2831_s3 + $0x10] sm:$0xff]  ;;  %v61_v12 = vld [vmem:[%s2831_s3 + $0x18] sm:$0xff]  ;;  %v54_v14 = vld [vmem:[%s2832_s0] sm:$0xff] }
   0x4   :  { %2175 = vmatprep.subr.bf16.mxu0 %v2174_v3  ;;  %v2186_v13 = vpack.c.bf16 %v61_v12, %v60_v11  ;;  %v55_v15 = vld [vmem:[%s2832_s0 + $0x8] sm:$0xff]  ;;  %v239_v18 = vld [vmem:[%s2833_s7] sm:$0xff]  ;;  %v241_v21 = vld [vmem:[%s2833_s7 + $0x10] sm:$0xff]  ;;  %v333_v26 = vsub.s32 0, %v2513_v25  ;;  %s2344_s0 = smov 104  }
   0x5   :  { %2177 = vmatpush3.bf16.msra.mxu0 %v2174_v3  ;;  %v240_v19 = vld [vmem:[%s2833_s7 + $0x8] sm:$0xff]  ;;  %v242_v22 = vld [vmem:[%s2833_s7 + $0x18] sm:$0xff]  ;;  %v1923_v28 = vld [vmem:[%s2834_s6] ss:$0 sm:$0xff]  ;;  %s2346_s7 = smov 16  }
   0x6   :  { %2179 = vmatprep.subr.bf16.mxu0 %v2178_v7  ;;  %v2499_v20 = vpack.c.bf16 %v240_v19, %v239_v18  ;;  %v2509_v23 = vpack.c.bf16 %v242_v22, %v241_v21  ;;  %v2522_v29 = vld [vmem:[%s2835_s5] sm:$0xf]  ;;  %s2343_s5 = smov 112  }
   0x7   :  { %v334_v32 = vrot.slane %v2522_v29, %v333_v26 }
   0x8   :  { %v2436_v0 = vld [vmem:[%s2848_s23] sm:$0xff]  ;;  %v2460_v6 = vld [vmem:[%s2848_s23 + $0x8] sm:$0xff]  ;;  %2191 = vmatprep.subr.bf16.mxu1 %v2499_v20 }
   0x9   :  { %619 = vrot.lane.b32.xlu0 %v2436_v0, %s2342_s28  ;;  %2041 = vmatprep.mubr.msk.f32.mxu0 %vm66_vm0, %v2436_v0 }
   0xa   :  { %2181 = vmatpush3.bf16.msra.mxu0 %v2178_v7  ;;  %2193 = vmatpush3.bf16.msra.mxu1 %v2499_v20 }
   0xb   :  { %2183 = vmatprep.subr.bf16.mxu0 %v2182_v10  ;;  %2195 = vmatprep.subr.bf16.mxu1 %v2509_v23 }
   0xc   :  { %980 = vrot.lane.b32.xlu1 %v2436_v0, %s2343_s5 }
   0xd   :  { %621 = vrot.lane.b32.xlu0 %v2460_v6, %s2342_s28  ;;  %2042 = vmatmul.mubr.msk.f32.vlgmr.msra.gmra.mrb[0].mxu0 %vm66_vm0, %v2460_v6 }
   0xe   :  { %2185 = vmatpush3.bf16.msra.mxu0 %v2182_v10  ;;  %2052 = vmatprep.mubr.msk.f32.mxu0 %vm66_vm0, %v54_v14 }
   0xf   :  { %2187 = vmatprep.subr.bf16.mxu0 %v2186_v13  ;;  %2197 = vmatpush3.bf16.msra.mxu1 %v2509_v23 }
  0x10   :  { %982 = vrot.lane.b32.xlu1 %v2460_v6, %s2343_s5 }
  0x11   :  { %1341 = vrot.lane.b32.xlu0 %v2436_v0, %s2344_s0 }
  0x12   :  { %2189 = vmatpush3.bf16.msra.mxu0 %v2186_v13 }
  0x13   :  { %2055 = vmatprep.subr.mxu0 %v62_v1 }
  0x14   :  { %1343 = vrot.lane.b32.xlu1 %v2460_v6, %s2344_s0 }
  0x15   :  { %2053 = vmatmul.mubr.msk.f32.vlgmr.msra.gmra.mrb[0].mxu0 %vm66_vm0, %v55_v15 }
  0x16   :  { %2056 = vmatpush3.msra.mxu0 %v62_v1  ;;  %2057 = vmatprep.mubr.msk.f32.mxu0 %vm249_vm1, %v2436_v0 }
  0x17   :  { %2082 = vmatprep.subr.mxu0 %v63_v2 }
  0x19   :  { %2058 = vmatmul.mubr.msk.f32.vlgmr.msra.gmra.mrb[2].mxu0 %vm249_vm1, %v2460_v6 }
  0x1a   :  { %2083 = vmatpush3.msra.mxu0 %v63_v2 }
  0x7b   :  { %v620_v16 = vpop.permute.xlu0 %619 }
  0x7c   :  { %2084 = vmatprep.mubr.msk.f32.mxu0 %vm249_vm1, %v620_v16 }
  0x7f   :  { %v622_v17 = vpop.permute.xlu0 %621 }
  0x80   :  { %2085 = vmatmul.mubr.msk.f32.vlgmr.msra.gmra.mrb[4].mxu0 %vm249_vm1, %v622_v17 }
  0xe8   :  { %v2054_v27 = vpop.f32.mrb[0].mxu0 }
  0xe9   :  { %v220_v30 = vpop.f32.mrb[1].mxu0  ;;  %v2524_v31 = vadd.f32 %v2054_v27, %v1923_v28 }
  0xea   :  { %v2527_v33 = vadd.f32 %v1923_v28, %v220_v30 }
  0xec   :  { %v2059_v34 = vpop.f32.mrb[2].mxu0 }
  0xed   :  { %v330_v35 = vsub.f32 %v2524_v31, %v2059_v34  ;;  %v320_v36 = vpop.f32.mrb[3].mxu0 }
  0xee   :  { %v329_v37 = vsub.f32 %v2527_v33, %v320_v36 }
  0xef   :  { %v336_v38 = vadd.f32 %v334_v32, %v330_v35 }
  0xf0   :  { %v335_v39 = vadd.f32 %v334_v32, %v329_v37 }
  0xf1   :  { %v340_v40 = vmul.f32 0.70710677, %v336_v38  ;;  %v338_v32 = vmul.f32 0.5, %v336_v38  ;;  %v246_v38 = vld [vmem:[%s2836_s9 + $0x10] sm:$0xff] }
  0xf2   :  { %v339_v41 = vmul.f32 0.70710677, %v335_v39  ;;  %v337_v28 = vmul.f32 0.5, %v335_v39  ;;  %v247_v39 = vld [vmem:[%s2836_s9 + $0x18] sm:$0xff] }
  0xf3   :  { %v342_v42 = vand.u32 2147483647, %v340_v40  ;;  %vm382_vm2 = vcmp.lt.f32.partialorder %v340_v40, 0.0  ;;  %v244_v40 = vld [vmem:[%s2836_s9] sm:$0xff] }
  0xf4   :  { %v341_v43 = vand.u32 2147483647, %v339_v41  ;;  %vm381_vm3 = vcmp.lt.f32.partialorder %v339_v41, 0.0  ;;  %v245_v41 = vld [vmem:[%s2836_s9 + $0x8] sm:$0xff] }
  0xf5   :  { %v344_v44 = vmul.f32 0.3275911, %v342_v42  ;;  %v370_v48 = vsub.f32 0.0, %v342_v42 }
  0xf6   :  { %v343_v45 = vmul.f32 0.3275911, %v341_v43  ;;  %v369_v49 = vsub.f32 0.0, %v341_v43 }
  0xf7   :  { %v346_v46 = vadd.f32 1.0, %v344_v44  ;;  %v372_v51 = vmul.f32 %v370_v48, %v342_v42  ;;  %v2541_v42 = vpack.c.bf16 %v245_v41, %v244_v40  ;;  %v706_v44 = vsub.s32 1, %v2513_v25 }
  0xf8   :  { %v345_v47 = vadd.f32 1.0, %v343_v45  ;;  %v371_v54 = vmul.f32 %v369_v49, %v341_v43  ;;  %v2553_v43 = vpack.c.bf16 %v247_v39, %v246_v38 }
  0xf9   :  { %2270 = vrcp.f32 %v346_v46  ;;  %v375_v57 = vmul.f32 1.442695, %v372_v51  ;;  %2199 = vmatprep.subr.bf16.mxu1 %v2541_v42  ;;  %2215 = vmatprep.subr.bf16.mxu0 %v2541_v42  ;;  %v707_v45 = vrot.slane %v2522_v29, %v706_v44 }
  0xfa   :  { %2272 = vrcp.f32 %v345_v47  ;;  %v373_v60 = vmul.f32 1.442695, %v371_v54  ;;  %2217 = vmatpush3.bf16.msra.mxu0 %v2541_v42 }
  0xfb   :  { %2274 = vpow2.f32 %v375_v57  ;;  %2219 = vmatprep.subr.bf16.mxu0 %v2553_v43 }
  0xfc   :  { %2276 = vpow2.f32 %v373_v60 }
  0xfe   :  { %2221 = vmatpush3.bf16.msra.mxu0 %v2553_v43 }
  0xff   :  { %2223 = vmatprep.subr.bf16.mxu0 %v2499_v20 }
 0x103   :  { %v2271_v50 = vpop.eup %2270 }
 0x104   :  { %v2273_v52 = vpop.eup %2272  ;;  %v352_v53 = vmul.f32 1.0614054, %v2271_v50 }
 0x105   :  { %v351_v55 = vmul.f32 1.0614054, %v2273_v52  ;;  %v2275_v13 = vpop.eup %2274 }
 0x106   :  { %v354_v56 = vadd.f32 -1.4531521, %v352_v53  ;;  %v2277_v15 = vpop.eup %2276 }
 0x107   :  { %v353_v58 = vadd.f32 -1.4531521, %v351_v55 }
 0x108   :  { %v356_v59 = vmul.f32 %v2271_v50, %v354_v56 }
 0x109   :  { %v355_v61 = vmul.f32 %v2273_v52, %v353_v58  ;;  %v2582_v58 = vld [vmem:[%s2837_s8] ss:$0 sm:$0xff] }
 0x10a   :  { %v358_v62 = vadd.f32 1.4214138, %v356_v59 }
 0x10b   :  { %v357_v63 = vadd.f32 1.4214138, %v355_v61 }
 0x10c   :  { %v360_v1 = vmul.f32 %v2271_v50, %v358_v62 }
 0x10d   :  { %v359_v2 = vmul.f32 %v2273_v52, %v357_v63 }
 0x10e   :  { %v362_v3 = vadd.f32 -0.28449672, %v360_v1 }
 0x10f   :  { %v361_v7 = vadd.f32 -0.28449672, %v359_v2 }
 0x110   :  { %v364_v8 = vmul.f32 %v2271_v50, %v362_v3 }
 0x111   :  { %v363_v9 = vmul.f32 %v2273_v52, %v361_v7 }
 0x112   :  { %v366_v10 = vadd.f32 0.2548296, %v364_v8 }
 0x113   :  { %v365_v11 = vadd.f32 0.2548296, %v363_v9 }
 0x114   :  { %v368_v12 = vmul.f32 %v2271_v50, %v366_v10 }
 0x115   :  { %v367_v14 = vmul.f32 %v2273_v52, %v365_v11 }
 0x116   :  { %v378_v16 = vmul.f32 %v2275_v13, %v368_v12 }
 0x117   :  { %v377_v17 = vmul.f32 %v2277_v15, %v367_v14 }
 0x118   :  { %v380_v18 = vsub.f32 1.0, %v378_v16 }
 0x119   :  { %v379_v19 = vsub.f32 1.0, %v377_v17 }
 0x11a   :  { %v384_v21 = vsub.f32 0.0, %v380_v18 }
 0x11b   :  { %v383_v22 = vsub.f32 0.0, %v379_v19 }
 0x11c   :  { %v386_v24 = vsel %vm382_vm2, %v384_v21, %v380_v18 }
 0x11d   :  { %v388_v26 = vadd.f32 1.0, %v386_v24  ;;  %v385_v27 = vsel %vm381_vm3, %v383_v22, %v379_v19 }
 0x11e   :  { %v387_v30 = vadd.f32 1.0, %v385_v27 }
 0x11f   :  { %v390_v35 = vmul.f32 %v388_v26, %v338_v32 }
 0x120   :  { %v389_v34 = vmul.f32 %v387_v30, %v337_v28 }
 0x122   :  { %2068 = vmatprep.mubr.msk.f32.mxu1 %vm66_vm0, %v389_v34 }
 0x123   :  { %2069 = vmatmul.mubr.msk.f32.vlgmr.msra.gmra.mrb[0].mxu1 %vm66_vm0, %v390_v35 }
 0x124   :  { %2201 = vmatpush3.bf16.msra.mxu1 %v2541_v42 }
 0x125   :  { %2203 = vmatprep.subr.bf16.mxu1 %v2553_v43 }
 0x128   :  { %2205 = vmatpush3.bf16.msra.mxu1 %v2553_v43 }
 0x129   :  { %2207 = vmatprep.subr.bf16.mxu1 %v2499_v20 }
 0x153   :  { %v2086_v36 = vpop.f32.mrb[4].mxu0 }
 0x154   :  { %v693_v37 = vpop.f32.mrb[5].mxu0  ;;  %v703_v48 = vsub.f32 %v2524_v31, %v2086_v36 }
 0x155   :  { %v702_v46 = vsub.f32 %v2527_v33, %v693_v37 }
 0x156   :  { %v2572_v50 = vadd.f32 %v707_v45, %v703_v48 }
 0x157   :  { %v2566_v47 = vadd.f32 %v707_v45, %v702_v46 }
 0x158   :  { %v2576_v0 = vmul.f32 0.70710677, %v2572_v50 }
 0x159   :  { %v2570_v49 = vmul.f32 0.70710677, %v2566_v47 }
 0x15a   :  { %v715_v52 = vand.u32 2147483647, %v2576_v0  ;;  %vm755_vm7 = vcmp.lt.f32.partialorder %v2576_v0, 0.0 }
 0x15b   :  { %v714_v51 = vand.u32 2147483647, %v2570_v49  ;;  %vm754_vm4 = vcmp.lt.f32.partialorder %v2570_v49, 0.0 }
 0x15c   :  { %v717_v54 = vmul.f32 0.3275911, %v715_v52  ;;  %v743_v24 = vsub.f32 0.0, %v715_v52 }
 0x15d   :  { %v716_v6 = vmul.f32 0.3275911, %v714_v51  ;;  %v742_v16 = vsub.f32 0.0, %v714_v51 }
 0x15e   :  { %v719_v55 = vadd.f32 1.0, %v717_v54  ;;  %v745_v34 = vmul.f32 %v743_v24, %v715_v52 }
 0x15f   :  { %v718_v53 = vadd.f32 1.0, %v716_v6  ;;  %v744_v21 = vmul.f32 %v742_v16, %v714_v51 }
 0x160   :  { %v748_v45 = vmul.f32 1.442695, %v745_v34 }
 0x161   :  { %2278 = vrcp.f32 %v718_v53  ;;  %v746_v28 = vmul.f32 1.442695, %v744_v21 }
 0x162   :  { %2280 = vrcp.f32 %v719_v55 }
 0x16b   :  { %v2279_v56 = vpop.eup %2278 }
 0x16c   :  { %v724_v57 = vmul.f32 1.0614054, %v2279_v56  ;;  %v2584_v60 = vpop.eup %2280 }
 0x16d   :  { %v725_v3 = vmul.f32 1.0614054, %v2584_v60 }
 0x16e   :  { %v726_v61 = vadd.f32 -1.4531521, %v724_v57 }
 0x16f   :  { %v727_v12 = vadd.f32 -1.4531521, %v725_v3 }
 0x170   :  { %v728_v8 = vmul.f32 %v2279_v56, %v726_v61 }
 0x171   :  { %v729_v18 = vmul.f32 %v2584_v60, %v727_v12 }
 0x172   :  { %v730_v14 = vadd.f32 1.4214138, %v728_v8 }
 0x173   :  { %v731_v22 = vadd.f32 1.4214138, %v729_v18 }
 0x174   :  { %v732_v19 = vmul.f32 %v2279_v56, %v730_v14 }
 0x175   :  { %v733_v32 = vmul.f32 %v2584_v60, %v731_v22 }
 0x176   :  { %v734_v26 = vadd.f32 -0.28449672, %v732_v19 }
 0x177   :  { %v735_v44 = vadd.f32 -0.28449672, %v733_v32 }
 0x178   :  { %v736_v36 = vmul.f32 %v2279_v56, %v734_v26 }
 0x179   :  { %v737_v57 = vmul.f32 %v2584_v60, %v735_v44 }
 0x17a   :  { %v738_v48 = vadd.f32 0.2548296, %v736_v36 }
 0x1f6   :  { %v2070_v59 = vpop.f32.mrb[0].mxu1 }
 0x1f7   :  { %v2587_v62 = vadd.f32 %v2070_v59, %v2582_v58  ;;  %v469_v63 = vpop.f32.mrb[1].mxu1  ;;  %v740_v59 = vmul.f32 %v2279_v56, %v738_v48 }
 0x1f8   :  { %v2590_v1 = vadd.f32 %v2582_v58, %v469_v63 }
 0x1f9   :  { %v2593_v2 = vmul.f32 0.70710677, %v2587_v62  ;;  %v479_v48 = vmul.f32 0.5, %v2587_v62  ;;  %v981_v62 = vpop.permute.xlu1 %980 }
 0x1fa   :  { %v2597_v7 = vmul.f32 0.70710677, %v2590_v1 }
 0x1fb   :  { %v483_v9 = vand.u32 2147483647, %v2593_v2  ;;  %vm523_vm5 = vcmp.lt.f32.partialorder %v2593_v2, 0.0 }
 0x1fc   :  { %v482_v10 = vand.u32 2147483647, %v2597_v7  ;;  %vm522_vm6 = vcmp.lt.f32.partialorder %v2597_v7, 0.0 }
 0x1fd   :  { %v485_v11 = vmul.f32 0.3275911, %v483_v9  ;;  %v511_v27 = vsub.f32 0.0, %v483_v9  ;;  %v983_v7 = vpop.permute.xlu1 %982 }
 0x1fe   :  { %v484_v13 = vmul.f32 0.3275911, %v482_v10  ;;  %v510_v30 = vsub.f32 0.0, %v482_v10 }
 0x1ff   :  { %v487_v15 = vadd.f32 1.0, %v485_v11  ;;  %v513_v37 = vmul.f32 %v511_v27, %v483_v9  ;;  %v739_v9 = vadd.f32 0.2548296, %v737_v57 }
 0x200   :  { %v486_v17 = vadd.f32 1.0, %v484_v13  ;;  %v512_v38 = vmul.f32 %v510_v30, %v482_v10 }
 0x201   :  { %2282 = vrcp.f32 %v487_v15  ;;  %v516_v51 = vmul.f32 1.442695, %v513_v37  ;;  %v741_v15 = vmul.f32 %v2584_v60, %v739_v9 }
 0x202   :  { %2284 = vrcp.f32 %v486_v17  ;;  %v514_v54 = vmul.f32 1.442695, %v512_v38 }
 0x203   :  { %2286 = vpow2.f32 %v746_v28 }
 0x204   :  { %2288 = vpow2.f32 %v748_v45  ;;  %v478_v45 = vmul.f32 0.5, %v2590_v1 }
 0x205   :  { %2290 = vpow2.f32 %v516_v51  ;;  %v710_v51 = vmul.f32 0.5, %v2566_v47  ;;  %v711_v47 = vmul.f32 0.5, %v2572_v50 }
 0x206   :  { %2292 = vpow2.f32 %v514_v54 }
 0x20b   :  { %v2283_v35 = vpop.eup %2282 }
 0x20c   :  { %v2285_v40 = vpop.eup %2284  ;;  %v493_v41 = vmul.f32 1.0614054, %v2283_v35 }
 0x20d   :  { %v492_v39 = vmul.f32 1.0614054, %v2285_v40  ;;  %v2287_v8 = vpop.eup %2286 }
 0x20e   :  { %v495_v46 = vadd.f32 -1.4531521, %v493_v41  ;;  %v750_v11 = vmul.f32 %v2287_v8, %v740_v59  ;;  %v2289_v19 = vpop.eup %2288 }
 0x20f   :  { %v494_v6 = vadd.f32 -1.4531521, %v492_v39  ;;  %v2291_v56 = vpop.eup %2290  ;;  %v751_v26 = vmul.f32 %v2289_v19, %v741_v15 }
 0x210   :  { %v497_v53 = vmul.f32 %v2283_v35, %v495_v46  ;;  %v752_v17 = vsub.f32 1.0, %v750_v11  ;;  %v2293_v24 = vpop.eup %2292 }
 0x211   :  { %v496_v55 = vmul.f32 %v2285_v40, %v494_v6  ;;  %v753_v36 = vsub.f32 1.0, %v751_v26 }
 0x212   :  { %v499_v52 = vadd.f32 1.4214138, %v497_v53  ;;  %v756_v28 = vsub.f32 0.0, %v752_v17 }
 0x213   :  { %v498_v61 = vadd.f32 1.4214138, %v496_v55  ;;  %v757_v39 = vsub.f32 0.0, %v753_v36 }
 0x214   :  { %v501_v63 = vmul.f32 %v2283_v35, %v499_v52  ;;  %v758_v41 = vsel %vm754_vm4, %v756_v28, %v752_v17 }
 0x215   :  { %v500_v3 = vmul.f32 %v2285_v40, %v498_v61  ;;  %v760_v44 = vadd.f32 1.0, %v758_v41  ;;  %v759_v2 = vsel %vm755_vm7, %v757_v39, %v753_v36  ;;  %vm1728_vm7 = vcmask 130048  }
 0x216   :  { %v503_v10 = vadd.f32 -0.28449672, %v501_v63  ;;  %v761_v1 = vadd.f32 1.0, %v759_v2 }
 0x217   :  { %v502_v12 = vadd.f32 -0.28449672, %v500_v3  ;;  %v762_v53 = vmul.f32 %v760_v44, %v710_v51 }
 0x218   :  { %v505_v13 = vmul.f32 %v2283_v35, %v503_v10  ;;  %v763_v0 = vmul.f32 %v761_v1, %v711_v47 }
 0x219   :  { %v504_v14 = vmul.f32 %v2285_v40, %v502_v12 }
 0x21a   :  { %v507_v16 = vadd.f32 0.2548296, %v505_v13 }
 0x21b   :  { %v506_v18 = vadd.f32 0.2548296, %v504_v14 }
 0x21c   :  { %v509_v21 = vmul.f32 %v2283_v35, %v507_v16 }
 0x21d   :  { %v508_v22 = vmul.f32 %v2285_v40, %v506_v18 }
 0x21e   :  { %v519_v27 = vmul.f32 %v2291_v56, %v509_v21 }
 0x21f   :  { %v518_v30 = vmul.f32 %v2293_v24, %v508_v22 }
 0x220   :  { %v521_v32 = vsub.f32 1.0, %v519_v27 }
 0x221   :  { %v520_v34 = vsub.f32 1.0, %v518_v30 }
 0x222   :  { %v525_v37 = vsub.f32 0.0, %v521_v32 }
 0x223   :  { %v524_v60 = vsub.f32 0.0, %v520_v34 }
 0x224   :  { %v527_v38 = vsel %vm523_vm5, %v525_v37, %v521_v32 }
 0x225   :  { %v529_v35 = vadd.f32 1.0, %v527_v38  ;;  %v526_v40 = vsel %vm522_vm6, %v524_v60, %v520_v34  ;;  %vm1908_vm6 = vcmask 7168  }
 0x226   :  { %v528_v46 = vadd.f32 1.0, %v526_v40 }
 0x227   :  { %v531_v6 = vmul.f32 %v529_v35, %v479_v48 }
 0x228   :  { %v530_v49 = vmul.f32 %v528_v46, %v478_v45 }
 0x22a   :  { %2079 = vmatprep.mubr.msk.f32.mxu1 %vm66_vm0, %v530_v49 }
 0x22b   :  { %2080 = vmatmul.mubr.msk.f32.vlgmr.msra.gmra.mrb[2].mxu1 %vm66_vm0, %v531_v6 }
 0x22c   :  { %2209 = vmatpush3.bf16.msra.mxu1 %v2499_v20  ;;  %2095 = vmatprep.mubr.msk.f32.mxu1 %vm66_vm0, %v762_v53 }
 0x22d   :  { %2211 = vmatprep.subr.bf16.mxu1 %v2509_v23 }
 0x230   :  { %2213 = vmatpush3.bf16.msra.mxu1 %v2509_v23 }
 0x231   :  { %2109 = vmatprep.subr.mxu1 %v2448_v4 }
 0x233   :  { %2096 = vmatmul.mubr.msk.f32.vlgmr.msra.gmra.mrb[4].mxu1 %vm66_vm0, %v763_v0 }
 0x234   :  { %2110 = vmatpush3.msra.mxu1 %v2448_v4  ;;  %2111 = vmatprep.mubr.msk.f32.mxu1 %vm249_vm1, %v981_v62  ;;  %v1067_v4 = vsub.s32 2, %v2513_v25 }
 0x235   :  { %2231 = vmatprep.subr.bf16.mxu1 %v2541_v42 }
 0x236   :  { %v1068_v63 = vrot.slane %v2522_v29, %v1067_v4 }
 0x237   :  { %2112 = vmatmul.mubr.msk.f32.vlgmr.msra.gmra.mrb[6].mxu1 %vm249_vm1, %v983_v7 }
 0x238   :  { %2233 = vmatpush3.bf16.msra.mxu1 %v2541_v42 }
 0x239   :  { %2235 = vmatprep.subr.bf16.mxu1 %v2553_v43 }
 0x23c   :  { %2237 = vmatpush3.bf16.msra.mxu1 %v2553_v43 }
 0x23d   :  { %2239 = vmatprep.subr.bf16.mxu1 %v2499_v20 }
 0x2fe   :  { %v2629_v50 = vpop.f32.mrb[2].mxu1 }
 0x2ff   :  { %v2631_v54 = vpop.f32.mrb[3].mxu1 }
 0x306   :  { %v2097_v55 = vpop.f32.mrb[4].mxu1 }
 0x307   :  { %v2635_v57 = vadd.f32 %v2097_v55, %v2582_v58  ;;  %v836_v52 = vpop.f32.mrb[5].mxu1 }
 0x308   :  { %v2638_v59 = vadd.f32 %v2582_v58, %v836_v52 }
 0x309   :  { %v2641_v61 = vmul.f32 0.70710677, %v2635_v57 }
 0x30a   :  { %v2645_v3 = vmul.f32 0.70710677, %v2638_v59  ;;  %v2113_v8 = vpop.f32.mrb[6].mxu1 }
 0x30b   :  { %v850_v9 = vand.u32 2147483647, %v2641_v61  ;;  %v1064_v10 = vsub.f32 %v2524_v31, %v2113_v8  ;;  %v1054_v11 = vpop.f32.mrb[7].mxu1  ;;  %vm890_vm8 = vcmp.lt.f32.partialorder %v2641_v61, 0.0 }
 0x30c   :  { %v849_v12 = vand.u32 2147483647, %v2645_v3  ;;  %v1063_v13 = vsub.f32 %v2527_v33, %v1054_v11  ;;  %vm889_vm9 = vcmp.lt.f32.partialorder %v2645_v3, 0.0 }
 0x30d   :  { %v852_v14 = vmul.f32 0.3275911, %v850_v9  ;;  %v2651_v15 = vadd.f32 %v1068_v63, %v1064_v10  ;;  %v878_v32 = vsub.f32 0.0, %v850_v9 }
 0x30e   :  { %v851_v16 = vmul.f32 0.3275911, %v849_v12  ;;  %v2653_v17 = vadd.f32 %v1068_v63, %v1063_v13  ;;  %v877_v34 = vsub.f32 0.0, %v849_v12 }
 0x30f   :  { %v854_v18 = vadd.f32 1.0, %v852_v14  ;;  %v2656_v19 = vmul.f32 0.70710677, %v2651_v15  ;;  %v880_v37 = vmul.f32 %v878_v32, %v850_v9 }
 0x310   :  { %v853_v21 = vadd.f32 1.0, %v851_v16  ;;  %v2659_v56 = vmul.f32 0.70710677, %v2653_v17  ;;  %v879_v38 = vmul.f32 %v877_v34, %v849_v12 }
 0x311   :  { %2294 = vrcp.f32 %v854_v18  ;;  %v1076_v22 = vand.u32 2147483647, %v2656_v19  ;;  %v883_v45 = vmul.f32 1.442695, %v880_v37  ;;  %vm1116_vm10 = vcmp.lt.f32.partialorder %v2656_v19, 0.0 }
 0x312   :  { %2296 = vrcp.f32 %v853_v21  ;;  %v1075_v24 = vand.u32 2147483647, %v2659_v56  ;;  %v881_v51 = vmul.f32 1.442695, %v879_v38  ;;  %vm1115_vm11 = vcmp.lt.f32.partialorder %v2659_v56, 0.0 }
 0x313   :  { %v1078_v26 = vmul.f32 0.3275911, %v1076_v22  ;;  %v1104_v40 = vsub.f32 0.0, %v1076_v22  ;;  %v1072_v19 = vmul.f32 0.5, %v2651_v15  ;;  %v2689_v15 = vld [vmem:[%s2838_s10] ss:$0 sm:$0xff] }
 0x314   :  { %v1077_v27 = vmul.f32 0.3275911, %v1075_v24  ;;  %v1103_v44 = vsub.f32 0.0, %v1075_v24 }
 0x315   :  { %v1080_v28 = vadd.f32 1.0, %v1078_v26  ;;  %v1106_v2 = vmul.f32 %v1104_v40, %v1076_v22 }
 0x316   :  { %v1079_v30 = vadd.f32 1.0, %v1077_v27  ;;  %v1105_v47 = vmul.f32 %v1103_v44, %v1075_v24 }
 0x317   :  { %2298 = vrcp.f32 %v1080_v28  ;;  %v1109_v63 = vmul.f32 1.442695, %v1106_v2 }
 0x318   :  { %2300 = vrcp.f32 %v1079_v30  ;;  %v1107_v11 = vmul.f32 1.442695, %v1105_v47 }
 0x319   :  { %2302 = vpow2.f32 %v883_v45 }
 0x31a   :  { %2304 = vpow2.f32 %v881_v51 }
 0x31b   :  { %v2295_v36 = vpop.eup %2294  ;;  %2306 = vpow2.f32 %v1109_v63 }
 0x31c   :  { %v2297_v41 = vpop.eup %2296  ;;  %v860_v60 = vmul.f32 1.0614054, %v2295_v36  ;;  %2308 = vpow2.f32 %v1107_v11 }
 0x31d   :  { %v859_v35 = vmul.f32 1.0614054, %v2297_v41 }
 0x31e   :  { %v862_v39 = vadd.f32 -1.4531521, %v860_v60 }
 0x31f   :  { %v861_v46 = vadd.f32 -1.4531521, %v859_v35 }
 0x320   :  { %v864_v48 = vmul.f32 %v2295_v36, %v862_v39 }
 0x321   :  { %v2299_v49 = vpop.eup %2298  ;;  %v863_v6 = vmul.f32 %v2297_v41, %v861_v46 }
 0x322   :  { %v2301_v53 = vpop.eup %2300  ;;  %v866_v1 = vadd.f32 1.4214138, %v864_v48  ;;  %v1086_v62 = vmul.f32 1.0614054, %v2299_v49 }
 0x323   :  { %v865_v0 = vadd.f32 1.4214138, %v863_v6  ;;  %v1085_v7 = vmul.f32 1.0614054, %v2301_v53  ;;  %v2303_v32 = vpop.eup %2302 }
 0x324   :  { %v868_v4 = vmul.f32 %v2295_v36, %v866_v1  ;;  %v1088_v55 = vadd.f32 -1.4531521, %v1086_v62  ;;  %v2305_v60 = vpop.eup %2304 }
 0x325   :  { %v867_v52 = vmul.f32 %v2297_v41, %v865_v0  ;;  %v1087_v8 = vadd.f32 -1.4531521, %v1085_v7  ;;  %v2307_v2 = vpop.eup %2306 }
 0x326   :  { %v870_v9 = vadd.f32 -0.28449672, %v868_v4  ;;  %v1090_v10 = vmul.f32 %v2299_v49, %v1088_v55  ;;  %v2309_v62 = vpop.eup %2308  ;;  %v845_v55 = vmul.f32 0.5, %v2638_v59  ;;  %v1071_v59 = vmul.f32 0.5, %v2653_v17  ;;  %v1344_v17 = vpop.permute.xlu1 %1343 }
 0x327   :  { %v869_v12 = vadd.f32 -0.28449672, %v867_v52  ;;  %v1089_v13 = vmul.f32 %v2301_v53, %v1087_v8  ;;  %v846_v8 = vmul.f32 0.5, %v2635_v57 }
 0x328   :  { %v872_v14 = vmul.f32 %v2295_v36, %v870_v9  ;;  %v1092_v16 = vadd.f32 1.4214138, %v1090_v10 }
 0x329   :  { %v871_v18 = vmul.f32 %v2297_v41, %v869_v12  ;;  %v1091_v21 = vadd.f32 1.4214138, %v1089_v13 }
 0x32a   :  { %v874_v22 = vadd.f32 0.2548296, %v872_v14  ;;  %v1094_v24 = vmul.f32 %v2299_v49, %v1092_v16  ;;  %v1342_v14 = vpop.permute.xlu0 %1341 }
 0x32b   :  { %v873_v26 = vadd.f32 0.2548296, %v871_v18  ;;  %v1093_v27 = vmul.f32 %v2301_v53, %v1091_v21 }
 0x32c   :  { %v876_v28 = vmul.f32 %v2295_v36, %v874_v22  ;;  %v1096_v30 = vadd.f32 -0.28449672, %v1094_v24 }
 0x32d   :  { %v875_v34 = vmul.f32 %v2297_v41, %v873_v26  ;;  %v1095_v37 = vadd.f32 -0.28449672, %v1093_v27 }
 0x32e   :  { %v886_v38 = vmul.f32 %v2303_v32, %v876_v28  ;;  %v1098_v35 = vmul.f32 %v2299_v49, %v1096_v30 }
 0x32f   :  { %v885_v40 = vmul.f32 %v2305_v60, %v875_v34  ;;  %v1097_v39 = vmul.f32 %v2301_v53, %v1095_v37 }
 0x330   :  { %v888_v44 = vsub.f32 1.0, %v886_v38  ;;  %v1100_v45 = vadd.f32 0.2548296, %v1098_v35 }
 0x331   :  { %v887_v46 = vsub.f32 1.0, %v885_v40  ;;  %v1099_v48 = vadd.f32 0.2548296, %v1097_v39 }
 0x332   :  { %v892_v51 = vsub.f32 0.0, %v888_v44  ;;  %v1102_v6 = vmul.f32 %v2299_v49, %v1100_v45 }
 0x333   :  { %v891_v1 = vsub.f32 0.0, %v887_v46  ;;  %v1101_v36 = vmul.f32 %v2301_v53, %v1099_v48 }
 0x334   :  { %v894_v47 = vsel %vm890_vm8, %v892_v51, %v888_v44  ;;  %v1112_v41 = vmul.f32 %v2307_v2, %v1102_v6  ;;  %vm1731_vm8 = vcmask 195584  }
 0x335   :  { %v896_v0 = vadd.f32 1.0, %v894_v47  ;;  %v893_v7 = vsel %vm889_vm9, %v891_v1, %v887_v46  ;;  %v1111_v4 = vmul.f32 %v2309_v62, %v1101_v36 }
 0x336   :  { %v895_v52 = vadd.f32 1.0, %v893_v7  ;;  %v1114_v63 = vsub.f32 1.0, %v1112_v41 }
 0x337   :  { %v1113_v49 = vsub.f32 1.0, %v1111_v4  ;;  %v898_v61 = vmul.f32 %v896_v0, %v846_v8 }
 0x338   :  { %v897_v9 = vmul.f32 %v895_v52, %v845_v55  ;;  %v1118_v10 = vsub.f32 0.0, %v1114_v63 }
 0x339   :  { %v1117_v53 = vsub.f32 0.0, %v1113_v49 }
 0x33a   :  { %v1120_v11 = vsel %vm1116_vm10, %v1118_v10, %v1114_v63  ;;  %2106 = vmatprep.mubr.msk.f32.mxu0 %vm66_vm0, %v897_v9 }
 0x33b   :  { %v1119_v3 = vsel %vm1115_vm11, %v1117_v53, %v1113_v49  ;;  %2107 = vmatmul.mubr.msk.f32.vlgmr.msra.gmra.mrb[6].mxu0 %vm66_vm0, %v898_v61  ;;  %v1122_v57 = vadd.f32 1.0, %v1120_v11 }
 0x33c   :  { %v1121_v12 = vadd.f32 1.0, %v1119_v3  ;;  %2225 = vmatpush3.bf16.msra.mxu0 %v2499_v20 }
 0x33d   :  { %2227 = vmatprep.subr.bf16.mxu0 %v2509_v23  ;;  %v1124_v56 = vmul.f32 %v1122_v57, %v1072_v19 }
 0x33e   :  { %v1123_v13 = vmul.f32 %v1121_v12, %v1071_v59 }
 0x340   :  { %2229 = vmatpush3.bf16.msra.mxu0 %v2509_v23  ;;  %2122 = vmatprep.mubr.msk.f32.mxu0 %vm66_vm0, %v1123_v13 }
 0x341   :  { %2136 = vmatprep.subr.mxu0 %v2453_v5 }
 0x343   :  { %2123 = vmatmul.mubr.msk.f32.vlgmr.msra.gmra.mrb[8].mxu0 %vm66_vm0, %v1124_v56 }
 0x344   :  { %2137 = vmatpush3.msra.mxu0 %v2453_v5  ;;  %2138 = vmatprep.mubr.msk.f32.mxu0 %vm249_vm1, %v1342_v14 }
 0x345   :  { %2247 = vmatprep.subr.bf16.mxu0 %v2541_v42 }
 0x347   :  { %2139 = vmatmul.mubr.msk.f32.vlgmr.msra.gmra.mrb[10].mxu0 %vm249_vm1, %v1344_v17 }
 0x348   :  { %2249 = vmatpush3.bf16.msra.mxu0 %v2541_v42  ;;  %v1428_v42 = vsub.s32 3, %v2513_v25 }
 0x349   :  { %2251 = vmatprep.subr.bf16.mxu0 %v2553_v43 }
 0x34a   :  { %v1429_v28 = vrot.slane %v2522_v29, %v1428_v42 }
 0x34c   :  { %2253 = vmatpush3.bf16.msra.mxu0 %v2553_v43 }
 0x40e   :  { %v2108_v16 = vpop.f32.mrb[6].mxu0 }
 0x40f   :  { %v977_v5 = vadd.f32 %v2108_v16, %v2689_v15  ;;  %v971_v18 = vpop.f32.mrb[7].mxu0 }
 0x410   :  { %v972_v21 = vadd.f32 %v2689_v15, %v971_v18 }
 0x411   :  { %1706 = vrot.lane.b32.xlu1 %v977_v5, %s2345_s17 }
 0x412   :  { %1704 = vrot.lane.b32.xlu0 %v972_v21, %s2345_s17 }
 0x416   :  { %v2124_v22 = vpop.f32.mrb[8].mxu0 }
 0x417   :  { %v2695_v24 = vadd.f32 %v2124_v22, %v2582_v58  ;;  %v1197_v43 = vpop.f32.mrb[9].mxu0 }
 0x418   :  { %v2698_v26 = vadd.f32 %v2582_v58, %v1197_v43 }
 0x419   :  { %v2701_v27 = vmul.f32 0.70710677, %v2695_v24 }
 0x41a   :  { %v2705_v30 = vmul.f32 0.70710677, %v2698_v26  ;;  %v2140_v32 = vpop.f32.mrb[10].mxu0 }
 0x41b   :  { %v1211_v34 = vand.u32 2147483647, %v2701_v27  ;;  %v1425_v25 = vsub.f32 %v2524_v31, %v2140_v32  ;;  %v1415_v37 = vpop.f32.mrb[11].mxu0  ;;  %vm1251_vm12 = vcmp.lt.f32.partialorder %v2701_v27, 0.0 }
 0x41c   :  { %v1210_v60 = vand.u32 2147483647, %v2705_v30  ;;  %v1424_v38 = vsub.f32 %v2527_v33, %v1415_v37  ;;  %vm1250_vm13 = vcmp.lt.f32.partialorder %v2705_v30, 0.0 }
 0x41d   :  { %v1213_v35 = vmul.f32 0.3275911, %v1211_v34  ;;  %v2711_v40 = vadd.f32 %v1429_v28, %v1425_v25  ;;  %v1239_v36 = vsub.f32 0.0, %v1211_v34 }
 0x41e   :  { %v1212_v39 = vmul.f32 0.3275911, %v1210_v60  ;;  %v2713_v44 = vadd.f32 %v1429_v28, %v1424_v38  ;;  %v1238_v62 = vsub.f32 0.0, %v1210_v60 }
 0x41f   :  { %v1215_v29 = vadd.f32 1.0, %v1213_v35  ;;  %v2716_v45 = vmul.f32 0.70710677, %v2711_v40  ;;  %v1241_v41 = vmul.f32 %v1239_v36, %v1211_v34 }
 0x420   :  { %v1214_v46 = vadd.f32 1.0, %v1212_v39  ;;  %v2719_v48 = vmul.f32 0.70710677, %v2713_v44  ;;  %v1240_v4 = vmul.f32 %v1238_v62, %v1210_v60 }
 0x421   :  { %2310 = vrcp.f32 %v1215_v29  ;;  %v1437_v31 = vand.u32 2147483647, %v2716_v45  ;;  %v1244_v49 = vmul.f32 1.442695, %v1241_v41  ;;  %vm1477_vm14 = vcmp.lt.f32.partialorder %v2716_v45, 0.0 }
 0x422   :  { %2312 = vrcp.f32 %v1214_v46  ;;  %v1436_v33 = vand.u32 2147483647, %v2719_v48  ;;  %v1242_v61 = vmul.f32 1.442695, %v1240_v4  ;;  %vm1476_vm15 = vcmp.lt.f32.partialorder %v2719_v48, 0.0 }
 0x423   :  { %v1439_v51 = vmul.f32 0.3275911, %v1437_v31  ;;  %v1465_v52 = vsub.f32 0.0, %v1437_v31 }
 0x424   :  { %v1438_v6 = vmul.f32 0.3275911, %v1436_v33  ;;  %v1464_v8 = vsub.f32 0.0, %v1436_v33 }
 0x425   :  { %v1441_v2 = vadd.f32 1.0, %v1439_v51  ;;  %v1467_v3 = vmul.f32 %v1465_v52, %v1437_v31 }
 0x426   :  { %v1440_v1 = vadd.f32 1.0, %v1438_v6  ;;  %v1466_v13 = vmul.f32 %v1464_v8, %v1436_v33 }
 0x427   :  { %2314 = vrcp.f32 %v1441_v2  ;;  %v1470_v5 = vmul.f32 1.442695, %v1467_v3 }
 0x428   :  { %2316 = vrcp.f32 %v1440_v1  ;;  %v1468_v22 = vmul.f32 1.442695, %v1466_v13 }
 0x429   :  { %2318 = vpow2.f32 %v1244_v49 }
 0x42a   :  { %2320 = vpow2.f32 %v1242_v61 }
 0x42b   :  { %v2311_v47 = vpop.eup %2310  ;;  %2322 = vpow2.f32 %v1470_v5 }
 0x42c   :  { %v2313_v0 = vpop.eup %2312  ;;  %v1221_v7 = vmul.f32 1.0614054, %v2311_v47  ;;  %2324 = vpow2.f32 %v1468_v22  ;;  %v1433_v22 = vmul.f32 0.5, %v2711_v40 }
 0x42d   :  { %v1220_v55 = vmul.f32 1.0614054, %v2313_v0 }
 0x42e   :  { %v1223_v63 = vadd.f32 -1.4531521, %v1221_v7 }
 0x42f   :  { %v1222_v9 = vadd.f32 -1.4531521, %v1220_v55 }
 0x430   :  { %v1225_v10 = vmul.f32 %v2311_v47, %v1223_v63 }
 0x431   :  { %v2315_v53 = vpop.eup %2314  ;;  %v1224_v11 = vmul.f32 %v2313_v0, %v1222_v9 }
 0x432   :  { %v2317_v59 = vpop.eup %2316  ;;  %v1227_v12 = vadd.f32 1.4214138, %v1225_v10  ;;  %v1447_v57 = vmul.f32 1.0614054, %v2315_v53 }
 0x433   :  { %v1226_v19 = vadd.f32 1.4214138, %v1224_v11  ;;  %v1446_v56 = vmul.f32 1.0614054, %v2317_v59  ;;  %v2319_v31 = vpop.eup %2318 }
 0x434   :  { %v1229_v14 = vmul.f32 %v2311_v47, %v1227_v12  ;;  %v1449_v17 = vadd.f32 -1.4531521, %v1447_v57  ;;  %v2321_v6 = vpop.eup %2320  ;;  %v1206_v12 = vmul.f32 0.5, %v2698_v26  ;;  %v1738_v26 = vld [vmem:[%s2839_s11] sm:$0xff] }
 0x435   :  { %v1228_v16 = vmul.f32 %v2313_v0, %v1226_v19  ;;  %v1448_v18 = vadd.f32 -1.4531521, %v1446_v56  ;;  %v2323_v8 = vpop.eup %2322  ;;  %v1207_v19 = vmul.f32 0.5, %v2695_v24  ;;  %v1739_v24 = vld [vmem:[%s2839_s11 + $0x8] sm:$0xff] }
 0x436   :  { %v1231_v21 = vadd.f32 -0.28449672, %v1229_v14  ;;  %v1451_v42 = vmul.f32 %v2315_v53, %v1449_v17  ;;  %v2325_v9 = vpop.eup %2324  ;;  %v2254_v48 = vpack.c.bf16 %v1739_v24, %v1738_v26 }
 0x437   :  { %v1230_v43 = vadd.f32 -0.28449672, %v1228_v16  ;;  %v1450_v28 = vmul.f32 %v2317_v59, %v1448_v18  ;;  %v1432_v16 = vmul.f32 0.5, %v2713_v44 }
 0x438   :  { %v1233_v32 = vmul.f32 %v2311_v47, %v1231_v21  ;;  %v1453_v34 = vadd.f32 1.4214138, %v1451_v42  ;;  %v1740_v21 = vld [vmem:[%s2839_s11 + $0x10] sm:$0xff]  ;;  %v1741_v42 = vld [vmem:[%s2839_s11 + $0x18] sm:$0xff] }
 0x439   :  { %v1232_v25 = vmul.f32 %v2313_v0, %v1230_v43  ;;  %v1452_v37 = vadd.f32 1.4214138, %v1450_v28  ;;  %v2258_v44 = vpack.c.bf16 %v1741_v42, %v1740_v21  ;;  %v1736_v43 = vld [vmem:[%s2840_s2] sm:$0xff] }
 0x43a   :  { %v1235_v60 = vadd.f32 0.2548296, %v1233_v32  ;;  %v1455_v38 = vmul.f32 %v2315_v53, %v1453_v34 }
 0x43b   :  { %v1234_v35 = vadd.f32 0.2548296, %v1232_v25  ;;  %v1454_v39 = vmul.f32 %v2317_v59, %v1452_v37 }
 0x43c   :  { %v1237_v29 = vmul.f32 %v2311_v47, %v1235_v60  ;;  %v1457_v46 = vadd.f32 -0.28449672, %v1455_v38 }
 0x43d   :  { %v1236_v33 = vmul.f32 %v2313_v0, %v1234_v35  ;;  %v1456_v51 = vadd.f32 -0.28449672, %v1454_v39 }
 0x43e   :  { %v1247_v2 = vmul.f32 %v2319_v31, %v1237_v29  ;;  %v1459_v1 = vmul.f32 %v2315_v53, %v1457_v46  ;;  %v1950_v31 = vld [vmem:[%s2841_s12] ss:$0 sm:$0xff] }
 0x43f   :  { %v1246_v36 = vmul.f32 %v2321_v6, %v1236_v33  ;;  %v1458_v62 = vmul.f32 %v2317_v59, %v1456_v51 }
 0x440   :  { %v1249_v41 = vsub.f32 1.0, %v1247_v2  ;;  %v1461_v7 = vadd.f32 0.2548296, %v1459_v1 }
 0x441   :  { %v1248_v4 = vsub.f32 1.0, %v1246_v36  ;;  %v1460_v55 = vadd.f32 0.2548296, %v1458_v62 }
 0x442   :  { %v1253_v52 = vsub.f32 0.0, %v1249_v41  ;;  %v1463_v63 = vmul.f32 %v2315_v53, %v1461_v7 }
 0x443   :  { %v1252_v49 = vsub.f32 0.0, %v1248_v4  ;;  %v1462_v47 = vmul.f32 %v2317_v59, %v1460_v55 }
 0x444   :  { %v1255_v10 = vsel %vm1251_vm12, %v1253_v52, %v1249_v41  ;;  %v1473_v0 = vmul.f32 %v2323_v8, %v1463_v63 }
 0x445   :  { %v1257_v61 = vadd.f32 1.0, %v1255_v10  ;;  %v1254_v11 = vsel %vm1250_vm13, %v1252_v49, %v1248_v4  ;;  %v1472_v3 = vmul.f32 %v2325_v9, %v1462_v47 }
 0x446   :  { %v1256_v57 = vadd.f32 1.0, %v1254_v11  ;;  %v1475_v13 = vsub.f32 1.0, %v1473_v0 }
 0x447   :  { %v1474_v53 = vsub.f32 1.0, %v1472_v3  ;;  %v1259_v27 = vmul.f32 %v1257_v61, %v1207_v19 }
 0x448   :  { %v1258_v56 = vmul.f32 %v1256_v57, %v1206_v12  ;;  %v1479_v14 = vsub.f32 0.0, %v1475_v13 }
 0x449   :  { %v1478_v59 = vsub.f32 0.0, %v1474_v53 }
 0x44a   :  { %v1481_v17 = vsel %vm1477_vm14, %v1479_v14, %v1475_v13  ;;  %2133 = vmatprep.mubr.msk.f32.mxu1 %vm66_vm0, %v1258_v56 }
 0x44b   :  { %v1480_v30 = vsel %vm1476_vm15, %v1478_v59, %v1474_v53  ;;  %2134 = vmatmul.mubr.msk.f32.vlgmr.msra.gmra.mrb[8].mxu1 %vm66_vm0, %v1259_v27  ;;  %v1483_v5 = vadd.f32 1.0, %v1481_v17 }
 0x44c   :  { %v1482_v45 = vadd.f32 1.0, %v1480_v30  ;;  %2241 = vmatpush3.bf16.msra.mxu1 %v2499_v20 }
 0x44d   :  { %2243 = vmatprep.subr.bf16.mxu1 %v2509_v23  ;;  %v1485_v20 = vmul.f32 %v1483_v5, %v1433_v22 }
 0x44e   :  { %v1484_v18 = vmul.f32 %v1482_v45, %v1432_v16 }
 0x450   :  { %2245 = vmatpush3.bf16.msra.mxu1 %v2509_v23  ;;  %2149 = vmatprep.mubr.msk.f32.mxu1 %vm66_vm0, %v1484_v18  ;;  %v1737_v23 = vld [vmem:[%s2840_s2 + $0x8] sm:$0xff] }
 0x451   :  { %2255 = vmatprep.subr.bf16.mxu1 %v2254_v48 }
 0x453   :  { %2150 = vmatmul.mubr.msk.f32.vlgmr.msra.gmra.mrb[10].mxu1 %vm66_vm0, %v1485_v20 }
 0x454   :  { %2257 = vmatpush3.bf16.msra.mxu1 %v2254_v48  ;;  %2171 = vmatprep.mubr.msk.f32.mxu1 %vm66_vm0, %v1736_v43 }
 0x455   :  { %2259 = vmatprep.subr.bf16.mxu1 %v2258_v44 }
 0x458   :  { %2261 = vmatpush3.bf16.msra.mxu1 %v2258_v44 }
 0x45b   :  { %2172 = vmatmul.mubr.msk.f32.vlgmr.msra.gmra.mrb[12].mxu1 %vm66_vm0, %v1737_v23 }
 0x51e   :  { %v2135_v40 = vpop.f32.mrb[8].mxu1 }
 0x51f   :  { %v1338_v28 = vadd.f32 %v2135_v40, %v2689_v15  ;;  %v1332_v32 = vpop.f32.mrb[9].mxu1 }
 0x520   :  { %v1333_v34 = vadd.f32 %v2689_v15, %v1332_v32 }
 0x521   :  { %1714 = vrot.lane.b32.xlu1 %v1338_v28, %s2346_s7 }
 0x522   :  { %1712 = vrot.lane.b32.xlu0 %v1333_v34, %s2346_s7 }
 0x526   :  { %v2151_v25 = vpop.f32.mrb[10].mxu1 }
 0x527   :  { %v2761_v37 = vadd.f32 %v2151_v25, %v2582_v58  ;;  %v1558_v60 = vpop.f32.mrb[11].mxu1 }
 0x528   :  { %v2764_v38 = vadd.f32 %v2582_v58, %v1558_v60 }
 0x529   :  { %v2767_v35 = vmul.f32 0.70710677, %v2761_v37 }
 0x52a   :  { %v2770_v39 = vmul.f32 0.70710677, %v2764_v38 }
 0x52b   :  { %v1572_v29 = vand.u32 2147483647, %v2767_v35  ;;  %vm1612_vm2 = vcmp.lt.f32.partialorder %v2767_v35, 0.0 }
 0x52c   :  { %v1571_v46 = vand.u32 2147483647, %v2770_v39  ;;  %vm1611_vm3 = vcmp.lt.f32.partialorder %v2770_v39, 0.0 }
 0x52d   :  { %v1574_v33 = vmul.f32 0.3275911, %v1572_v29  ;;  %v1600_v8 = vsub.f32 0.0, %v1572_v29 }
 0x52e   :  { %v1573_v51 = vmul.f32 0.3275911, %v1571_v46  ;;  %v2173_v6 = vpop.f32.mrb[12].mxu1  ;;  %v1599_v47 = vsub.f32 0.0, %v1571_v46 }
 0x52f   :  { %v1576_v2 = vadd.f32 1.0, %v1574_v33  ;;  %v2777_v58 = vadd.f32 %v2173_v6, %v1950_v31  ;;  %v1821_v1 = vpop.f32.mrb[13].mxu1  ;;  %v1602_v0 = vmul.f32 %v1600_v8, %v1572_v29 }
 0x530   :  { %v1575_v36 = vadd.f32 1.0, %v1573_v51  ;;  %v2779_v62 = vadd.f32 %v1950_v31, %v1821_v1  ;;  %v1601_v3 = vmul.f32 %v1599_v47, %v1571_v46 }
 0x531   :  { %2326 = vrcp.f32 %v1576_v2  ;;  %v2782_v41 = vmul.f32 0.70710677, %v2777_v58  ;;  %v1605_v53 = vmul.f32 1.442695, %v1602_v0 }
 0x532   :  { %2328 = vrcp.f32 %v1575_v36  ;;  %v2785_v7 = vmul.f32 0.70710677, %v2779_v62  ;;  %v1603_v27 = vmul.f32 1.442695, %v1601_v3 }
 0x533   :  { %v1835_v4 = vand.u32 2147483647, %v2782_v41  ;;  %vm1875_vm4 = vcmp.lt.f32.partialorder %v2782_v41, 0.0  ;;  %v1953_v41 = vld [vmem:[%s2842_s13] ss:$0 sm:$0xff] }
 0x534   :  { %v1834_v55 = vand.u32 2147483647, %v2785_v7  ;;  %vm1874_vm5 = vcmp.lt.f32.partialorder %v2785_v7, 0.0 }
 0x535   :  { %v1837_v52 = vmul.f32 0.3275911, %v1835_v4  ;;  %v1863_v57 = vsub.f32 0.0, %v1835_v4 }
 0x536   :  { %v1836_v63 = vmul.f32 0.3275911, %v1834_v55  ;;  %v1862_v19 = vsub.f32 0.0, %v1834_v55 }
 0x537   :  { %v1839_v49 = vadd.f32 1.0, %v1837_v52  ;;  %v1865_v17 = vmul.f32 %v1863_v57, %v1835_v4 }
 0x538   :  { %v1838_v9 = vadd.f32 1.0, %v1836_v63  ;;  %v1864_v24 = vmul.f32 %v1862_v19, %v1834_v55 }
 0x539   :  { %2330 = vrcp.f32 %v1839_v49  ;;  %v1868_v21 = vmul.f32 1.442695, %v1865_v17 }
 0x53a   :  { %2332 = vrcp.f32 %v1838_v9  ;;  %v1866_v20 = vmul.f32 1.442695, %v1864_v24 }
 0x53b   :  { %v2327_v10 = vpop.eup %2326  ;;  %2334 = vpow2.f32 %v1605_v53 }
 0x53c   :  { %v2329_v61 = vpop.eup %2328  ;;  %v1582_v11 = vmul.f32 1.0614054, %v2327_v10  ;;  %2336 = vpow2.f32 %v1603_v27 }
 0x53d   :  { %v1581_v12 = vmul.f32 1.0614054, %v2329_v61  ;;  %2338 = vpow2.f32 %v1868_v21 }
 0x53e   :  { %v1584_v13 = vadd.f32 -1.4531521, %v1582_v11  ;;  %2340 = vpow2.f32 %v1866_v20 }
 0x53f   :  { %v1583_v56 = vadd.f32 -1.4531521, %v1581_v12 }
 0x540   :  { %v1586_v14 = vmul.f32 %v2327_v10, %v1584_v13 }
 0x541   :  { %v1585_v59 = vmul.f32 %v2329_v61, %v1583_v56  ;;  %v1567_v56 = vmul.f32 0.5, %v2764_v38  ;;  %v1831_v38 = vmul.f32 0.5, %v2777_v58 }
 0x542   :  { %v1588_v26 = vadd.f32 1.4214138, %v1586_v14 }
 0x543   :  { %v2331_v30 = vpop.eup %2330  ;;  %v1587_v16 = vadd.f32 1.4214138, %v1585_v59  ;;  %v1568_v59 = vmul.f32 0.5, %v2761_v37 }
 0x544   :  { %v2333_v45 = vpop.eup %2332  ;;  %v1590_v5 = vmul.f32 %v2327_v10, %v1588_v26  ;;  %v1845_v48 = vmul.f32 1.0614054, %v2331_v30 }
 0x545   :  { %v1589_v18 = vmul.f32 %v2329_v61, %v1587_v16  ;;  %v1844_v42 = vmul.f32 1.0614054, %v2333_v45  ;;  %v2335_v51 = vpop.eup %2334 }
 0x546   :  { %v1592_v22 = vadd.f32 -0.28449672, %v1590_v5  ;;  %v1847_v44 = vadd.f32 -1.4531521, %v1845_v48  ;;  %v2337_v1 = vpop.eup %2336 }
 0x547   :  { %v1591_v43 = vadd.f32 -0.28449672, %v1589_v18  ;;  %v1846_v23 = vadd.f32 -1.4531521, %v1844_v42  ;;  %v2339_v11 = vpop.eup %2338 }
 0x548   :  { %v1594_v40 = vmul.f32 %v2327_v10, %v1592_v22  ;;  %v1849_v28 = vmul.f32 %v2331_v30, %v1847_v44  ;;  %v2341_v12 = vpop.eup %2340  ;;  %v1707_v44 = vpop.permute.xlu1 %1706 }
 0x549   :  { %v1593_v32 = vmul.f32 %v2329_v61, %v1591_v43  ;;  %v1848_v34 = vmul.f32 %v2333_v45, %v1846_v23  ;;  %v1705_v43 = vpop.permute.xlu0 %1704 }
 0x54a   :  { %v1596_v25 = vadd.f32 0.2548296, %v1594_v40  ;;  %v1851_v60 = vadd.f32 1.4214138, %v1849_v28 }
 0x54b   :  { %v1595_v29 = vadd.f32 0.2548296, %v1593_v32  ;;  %v1850_v46 = vadd.f32 1.4214138, %v1848_v34 }
 0x54c   :  { %v1598_v31 = vmul.f32 %v2327_v10, %v1596_v25  ;;  %v1853_v33 = vmul.f32 %v2331_v30, %v1851_v60 }
 0x54d   :  { %v1597_v6 = vmul.f32 %v2329_v61, %v1595_v29  ;;  %v1852_v2 = vmul.f32 %v2333_v45, %v1850_v46 }
 0x54e   :  { %v1608_v36 = vmul.f32 %v2335_v51, %v1598_v31  ;;  %v1855_v4 = vadd.f32 -0.28449672, %v1853_v33  ;;  %v616_v51 = vadd.f32 %v2629_v50, %v2689_v15 }
 0x54f   :  { %v1607_v55 = vmul.f32 %v2337_v1, %v1597_v6  ;;  %v1854_v52 = vadd.f32 -0.28449672, %v1852_v2  ;;  %v611_v6 = vadd.f32 %v2689_v15, %v2631_v54 }
 0x550   :  { %v1610_v63 = vsub.f32 1.0, %v1608_v36  ;;  %v1857_v8 = vmul.f32 %v2331_v30, %v1855_v4  ;;  %v1727_v2 = vsel %vm249_vm1, %v616_v51, %v1707_v44 }
 0x551   :  { %v1609_v49 = vsub.f32 1.0, %v1607_v55  ;;  %v1856_v47 = vmul.f32 %v2333_v45, %v1854_v52  ;;  %v1726_v1 = vsel %vm249_vm1, %v611_v6, %v1705_v43 }
 0x552   :  { %v1614_v9 = vsub.f32 0.0, %v1610_v63  ;;  %v1859_v0 = vadd.f32 0.2548296, %v1857_v8 }
 0x553   :  { %v1613_v3 = vsub.f32 0.0, %v1609_v49  ;;  %v1858_v10 = vadd.f32 0.2548296, %v1856_v47 }
 0x554   :  { %v1616_v57 = vsel %vm1612_vm2, %v1614_v9, %v1610_v63  ;;  %v1861_v61 = vmul.f32 %v2331_v30, %v1859_v0 }
 0x555   :  { %v1618_v13 = vadd.f32 1.0, %v1616_v57  ;;  %v1615_v19 = vsel %vm1611_vm3, %v1613_v3, %v1609_v49  ;;  %v1860_v53 = vmul.f32 %v2333_v45, %v1858_v10  ;;  %v1830_v45 = vmul.f32 0.5, %v2779_v62 }
 0x556   :  { %v1617_v14 = vadd.f32 1.0, %v1615_v19  ;;  %v1871_v27 = vmul.f32 %v2339_v11, %v1861_v61  ;;  %v22_v62 = vstv %s2843_s14  ;;  %s2347_s14 = smov 24  }
 0x557   :  { %v1870_v17 = vmul.f32 %v2341_v12, %v1860_v53  ;;  %v1620_v35 = vmul.f32 %v1618_v13, %v1568_v59  ;;  %23 = vst [vmem:[#allocation2] sm:$0x1] %v22_v62 }
 0x558   :  { %v1619_v26 = vmul.f32 %v1617_v14, %v1567_v56  ;;  %v1873_v24 = vsub.f32 1.0, %v1871_v27 }
 0x559   :  { %v1872_v16 = vsub.f32 1.0, %v1870_v17 }
 0x55a   :  { %2160 = vmatprep.mubr.msk.f32.mxu0 %vm66_vm0, %v1619_v26  ;;  %v1877_v39 = vsub.f32 0.0, %v1873_v24 }
 0x55b   :  { %2161 = vmatmul.mubr.msk.f32.vlgmr.msra.gmra.mrb[12].mxu0 %vm66_vm0, %v1620_v35  ;;  %v1876_v30 = vsub.f32 0.0, %v1872_v16 }
 0x55c   :  { %v1879_v37 = vsel %vm1875_vm4, %v1877_v39, %v1873_v24 }
 0x55d   :  { %v1881_v5 = vadd.f32 1.0, %v1879_v37  ;;  %v1878_v48 = vsel %vm1874_vm5, %v1876_v30, %v1872_v16 }
 0x55e   :  { %v1880_v18 = vadd.f32 1.0, %v1878_v48  ;;  %v1954_v28 = vld [vmem:[#allocation2] ss:$0 sm:$0xff] }
 0x55f   :  { %v1883_v21 = vmul.f32 %v1881_v5, %v1831_v38 }
 0x560   :  { %v1882_v42 = vmul.f32 %v1880_v18, %v1830_v45 }
 0x561   :  { %v1892_v22 = vmul.f32 %v1953_v41, %v1883_v21 }
 0x562   :  { %v1891_v7 = vmul.f32 %v1953_v41, %v1882_v42 }
 0x563   :  { %v1896_v20 = vsel %vm66_vm0, %v1892_v22, 0.0 }
 0x564   :  { %1897 = vadd.xlane.f32.xlu1 %v1896_v20  ;;  %v1893_v58 = vsel %vm66_vm0, %v1891_v7, 0.0 }
 0x565   :  { %1894 = vadd.xlane.f32.xlu0 %v1893_v58 }
 0x593   :  { %v1715_v23 = vpop.permute.xlu1 %1714 }
 0x594   :  { %v1713_v40 = vpop.permute.xlu0 %1712  ;;  %v1730_v36 = vsel %vm1728_vm7, %v1727_v2, %v1715_v23 }
 0x595   :  { %v1729_v55 = vsel %vm1728_vm7, %v1726_v1, %v1713_v40 }
 0x5f1   :  { %v1898_v32 = vpop.xlane.xlu1 %1897 }
 0x5f2   :  { %v1907_v34 = vadd.f32 %v1954_v28, %v1898_v32  ;;  %v1895_v25 = vpop.xlane.xlu0 %1894 }
 0x5f3   :  { %v1906_v60 = vadd.f32 %v1954_v28, %v1895_v25 }
 0x5f4   :  { %1910 = vst.msk [vmem:[%s2844_s16 + $0x8] sm:$0xff] %vm1908_vm6, %v1907_v34 }
 0x5f5   :  { %1909 = vst.msk [vmem:[%s2844_s16] sm:$0xff] %vm1908_vm6, %v1906_v60 }
 0x62e   :  { %v2162_v29 = vpop.f32.mrb[12].mxu0 }
 0x62f   :  { %v1699_v46 = vadd.f32 %v2162_v29, %v2689_v15  ;;  %v1693_v31 = vpop.f32.mrb[13].mxu0 }
 0x630   :  { %v1694_v33 = vadd.f32 %v2689_v15, %v1693_v31 }
 0x631   :  { %1722 = vrot.lane.b32.xlu1 %v1699_v46, %s2347_s14 }
 0x632   :  { %1720 = vrot.lane.b32.xlu0 %v1694_v33, %s2347_s14 }
 0x6a3   :  { %v1723_v4 = vpop.permute.xlu1 %1722 }
 0x6a4   :  { %v1733_v52 = vsel %vm1731_vm8, %v1730_v36, %v1723_v4  ;;  %v1721_v63 = vpop.permute.xlu0 %1720 }
 0x6a5   :  { %1735 = vst.msk [vmem:[%s2845_s15 + $0x8] sm:$0xff] %vm66_vm0, %v1733_v52  ;;  %v1732_v50 = vsel %vm1731_vm8, %v1729_v55, %v1721_v63 }
 0x6a6   :  { %1734 = vst.msk [vmem:[%s2845_s15] sm:$0xff] %vm66_vm0, %v1732_v50 }

</bundles_post_ra>
